<compile_context>
chip_gen: v7x
topology: tpu7x:2x2x1
jax: 0.10.0
libtpu: 0.0.40
codegen_flags: <defaults>
</compile_context>

<pallas_src>
import functools

import jax
import jax.numpy as jnp
from jax.experimental import pallas as pl
from jax.experimental.pallas import tpu as pltpu

LN_EPS = 1e-5  # torch.nn.LayerNorm default


# ----------------------------- in-kernel helpers -----------------------------

def _layernorm(x, g, b):
    mean = jnp.mean(x, axis=-1, keepdims=True)
    var = jnp.mean(jnp.square(x - mean), axis=-1, keepdims=True)
    return (x - mean) * jax.lax.rsqrt(var + LN_EPS) * g + b


def _gelu_tanh(x):
    # tanh-approx GELU (one EUP tanh + few VALU ops); |diff| vs exact erf GELU
    # <~1e-3 worst case, ~1e-6 at the activation magnitudes seen here.
    c = 0.7978845608028654  # sqrt(2/pi)
    return 0.5 * x * (1.0 + jnp.tanh(c * (x + 0.044715 * x * x * x)))


def _attn_residual(x, g, b, wqkv, wout, bout, *, B, N, heads, dim_head):
    """x + to_out(softmax(Q K^T) V), with scale pre-folded into W_q. x: (B*N, D)."""
    inner = heads * dim_head
    xn = _layernorm(x, g, b)
    qkv = jnp.dot(xn, wqkv, preferred_element_type=jnp.float32)      # (B*N, 3*inner)
    q = qkv[:, :inner].reshape(B, N, inner)
    k = qkv[:, inner:2 * inner].reshape(B, N, inner)
    v = qkv[:, 2 * inner:].reshape(B, N, inner)

    acc = jnp.zeros((B * N, wout.shape[1]), jnp.float32)
    for h in range(heads):                                           # static, tiny
        lo = h * dim_head
        qh = q[:, :, lo:lo + dim_head]                               # (B, N, dh)
        kh = k[:, :, lo:lo + dim_head]
        vh = v[:, :, lo:lo + dim_head]
        dots = jnp.einsum('bid,bjd->bij', qh, kh,
                          preferred_element_type=jnp.float32)        # (B, N, N)
        dots = dots - jnp.max(dots, axis=-1, keepdims=True)
        e = jnp.exp(dots)
        p = e * pl.reciprocal(jnp.sum(e, axis=-1, keepdims=True), approx=True)
        oh = jnp.einsum('bij,bjd->bid', p, vh,
                        preferred_element_type=jnp.float32)          # (B, N, dh)
        # head-free accumulation: project with the h-th row-block of W_out
        # (sublane slice) and sum -- no lane concat of 8-wide head outputs.
        acc = acc + jnp.dot(oh.reshape(B * N, dim_head),
                            wout[lo:lo + dim_head, :],
                            preferred_element_type=jnp.float32)
    return x + acc + bout


def _ff_residual(x, g, b, w1, b1, w2, b2):
    xn = _layernorm(x, g, b)
    h = jnp.dot(xn, w1, preferred_element_type=jnp.float32) + b1
    h = _gelu_tanh(h)
    return x + jnp.dot(h, w2, preferred_element_type=jnp.float32) + b2


# ---------------------------------- kernel ------------------------------------

def dual_encoder_kernel(x_ref, vecs_ref, fb1_ref,
                        a1wqkv_ref, a1wout_ref, a2wqkv_ref, a2wout_ref,
                        fw1_ref, fw2_ref, o_ref,
                        *, B, N, D, depth, heads, dim_head):
    """One grid step = one stream; full depth stack unrolled in-kernel."""
    x = x_ref[0].reshape(B * N, D).astype(jnp.float32)

    for layer in range(depth):                                       # static unroll
        vec = vecs_ref[0, layer]                                     # (9, D)
        a1g, a1b, a1bo = vec[0:1], vec[1:2], vec[2:3]
        a2g, a2b, a2bo = vec[3:4], vec[4:5], vec[5:6]
        fg, fb, fb2 = vec[6:7], vec[7:8], vec[8:9]

        x = _attn_residual(x, a1g, a1b,
                           a1wqkv_ref[0, layer], a1wout_ref[0, layer], a1bo,
                           B=B, N=N, heads=heads, dim_head=dim_head)
        x = _attn_residual(x, a2g, a2b,
                           a2wqkv_ref[0, layer], a2wout_ref[0, layer], a2bo,
                           B=B, N=N, heads=heads, dim_head=dim_head)
        x = _ff_residual(x, fg, fb,
                         fw1_ref[0, layer], fb1_ref[0, layer],
                         fw2_ref[0, layer], fb2)

    o_ref[0] = x.reshape(B, N, D).astype(o_ref.dtype)


# --------------------------- parameter construction ---------------------------

def init_attn_params(key, dim, heads, dim_head):
    inner = heads * dim_head
    k1, k2, k3 = jax.random.split(key, 3)
    return dict(
        ln_g=jnp.ones((dim,), jnp.float32),
        ln_b=jnp.zeros((dim,), jnp.float32),
        wqkv=jax.random.normal(k1, (dim, 3 * inner), jnp.float32) * 0.02,
        wout=jax.random.normal(k2, (inner, dim), jnp.float32) * 0.02,
        bout=jax.random.normal(k3, (dim,), jnp.float32) * 0.02,
    )


def init_ff_params(key, dim, mlp_dim):
    k1, k2, k3, k4 = jax.random.split(key, 4)
    return dict(
        ln_g=jnp.ones((dim,), jnp.float32),
        ln_b=jnp.zeros((dim,), jnp.float32),
        w1=jax.random.normal(k1, (dim, mlp_dim), jnp.float32) * 0.02,
        b1=jax.random.normal(k2, (mlp_dim,), jnp.float32) * 0.02,
        w2=jax.random.normal(k3, (mlp_dim, dim), jnp.float32) * 0.02,
        b2=jax.random.normal(k4, (dim,), jnp.float32) * 0.02,
    )


def init_dual_encoder(key, dim, depth, heads, dim_head, mlp_dim):
    params_A, params_B = [], []
    for d in range(depth):
        keys = jax.random.split(jax.random.fold_in(key, d), 6)
        params_A.append(dict(
            attn1=init_attn_params(keys[0], dim, heads, dim_head),
            attn2=init_attn_params(keys[1], dim, heads, dim_head),
            ff=init_ff_params(keys[2], dim, mlp_dim)))
        params_B.append(dict(
            attn1=init_attn_params(keys[3], dim, heads, dim_head),
            attn2=init_attn_params(keys[4], dim, heads, dim_head),
            ff=init_ff_params(keys[5], dim, mlp_dim)))
    return params_A, params_B


# ---------------------------- parameter stacking --------------------------------

def _stack_mat(params_A, params_B, get, transform=None):
    """Stack a per-layer leaf into a (2_streams, depth, rows, cols) array."""
    def leaf(layer):
        w = get(layer)
        if transform is not None:
            w = transform(w)
        if w.ndim == 1:
            w = w[None, :]
        return w
    return jnp.stack([jnp.stack([leaf(l) for l in stream], axis=0)
                      for stream in (params_A, params_B)], axis=0)


def _stack_vectors(params_A, params_B):
    """Pack all nine dim-sized per-layer vectors into (2, depth, 9, D)."""
    def per_layer(l):
        rows = [l["attn1"]["ln_g"], l["attn1"]["ln_b"], l["attn1"]["bout"],
                l["attn2"]["ln_g"], l["attn2"]["ln_b"], l["attn2"]["bout"],
                l["ff"]["ln_g"], l["ff"]["ln_b"], l["ff"]["b2"]]
        return jnp.stack(rows, axis=0)
    return jnp.stack([jnp.stack([per_layer(l) for l in stream], axis=0)
                      for stream in (params_A, params_B)], axis=0)


# -------------------------------- forward pass ---------------------------------

def dual_encoder_forward(x_A, x_B, params_A, params_B, *, heads, dim_head):
    B, N, D = x_A.shape
    depth = len(params_A)
    inner = heads * dim_head
    scale = D ** (-0.5)   # original module scales dots by dim**-0.5 (not dim_head**-0.5)

    # fold the attention scale into W_qkv's Q columns (to_qkv has no bias).
    fold = lambda w: w.at[:, :inner].multiply(scale)

    st = functools.partial(_stack_mat, params_A, params_B)
    vecs = _stack_vectors(params_A, params_B)                        # (2, depth, 9, D)
    fb1 = st(lambda l: l["ff"]["b1"])                                # (2, depth, 1, mlp)
    a1wqkv = st(lambda l: l["attn1"]["wqkv"], fold)
    a1wout = st(lambda l: l["attn1"]["wout"])
    a2wqkv = st(lambda l: l["attn2"]["wqkv"], fold)
    a2wout = st(lambda l: l["attn2"]["wout"])
    fw1 = st(lambda l: l["ff"]["w1"])
    fw2 = st(lambda l: l["ff"]["w2"])

    x_both = jnp.stack([x_A, x_B], axis=0)                           # (2, B, N, D)

    def spec(arr):  # one (…) slab per stream, whole depth stack at once
        nrest = arr.ndim - 1
        return pl.BlockSpec((1,) + arr.shape[1:],
                            lambda s, _n=nrest: (s,) + (0,) * _n)

    kernel = functools.partial(dual_encoder_kernel, B=B, N=N, D=D, depth=depth,
                               heads=heads, dim_head=dim_head)
    out = pl.pallas_call(
        kernel,
        out_shape=jax.ShapeDtypeStruct((2, B, N, D), x_A.dtype),
        grid=(2,),
        in_specs=[spec(x_both), spec(vecs), spec(fb1),
                  spec(a1wqkv), spec(a1wout), spec(a2wqkv), spec(a2wout),
                  spec(fw1), spec(fw2)],
        out_specs=pl.BlockSpec((1, B, N, D), lambda s: (s, 0, 0, 0)),
        compiler_params=pltpu.CompilerParams(
            dimension_semantics=("parallel",)),   # one stream per TensorCore on v7x
    )(x_both, vecs, fb1, a1wqkv, a1wout, a2wqkv, a2wout, fw1, fw2)
    return out[0], out[1]


# ------------------------------ pure-JAX reference ------------------------------

def reference_forward(x_A, x_B, params_A, params_B, *, heads, dim_head):
    D = x_A.shape[-1]
    scale = D ** (-0.5)

    def ln(x, g, b):
        m = jnp.mean(x, axis=-1, keepdims=True)
        v = jnp.mean(jnp.square(x - m), axis=-1, keepdims=True)
        return (x - m) / jnp.sqrt(v + LN_EPS) * g + b

    def attn(x, p):
        Bx, Nx, _ = x.shape
        inner = heads * dim_head
        xn = ln(x, p["ln_g"], p["ln_b"])
        qkv = xn @ p["wqkv"]
        q, k, v = jnp.split(qkv, 3, axis=-1)
        hf = lambda t: t.reshape(Bx, Nx, heads, dim_head).transpose(0, 2, 1, 3)
        q, k, v = hf(q), hf(k), hf(v)
        dots = jnp.einsum('bhid,bhjd->bhij', q, k) * scale
        a = jax.nn.softmax(dots, axis=-1)
        o = jnp.einsum('bhij,bhjd->bhid', a, v)
        o = o.transpose(0, 2, 1, 3).reshape(Bx, Nx, inner)
        return x + o @ p["wout"] + p["bout"]

    def ff(x, p):
        xn = ln(x, p["ln_g"], p["ln_b"])
        h = jax.nn.gelu(xn @ p["w1"] + p["b1"], approximate=False)
        return x + h @ p["w2"] + p["b2"]

    for lA, lB in zip(params_A, params_B):
        x_A = attn(x_A, lA["attn1"]); x_B = attn(x_B, lB["attn1"])
        x_A = attn(x_A, lA["attn2"]); x_B = attn(x_B, lB["attn2"])
        x_A = ff(x_A, lA["ff"]);      x_B = ff(x_B, lB["ff"])
    return x_A, x_B


# ------------------------------------ main --------------------------------------

if __name__ == "__main__":
    dim, depth, heads, dim_head, mlp_dim = 32, 2, 2, 8, 64
    B, N = 2, 8

    key = jax.random.PRNGKey(0)
    kx, ky, kp = jax.random.split(key, 3)
    x_A = jax.random.normal(kx, (B, N, dim), jnp.float32)
    x_B = jax.random.normal(ky, (B, N, dim), jnp.float32)

    params_A, params_B = init_dual_encoder(kp, dim, depth, heads, dim_head, mlp_dim)

    fwd = jax.jit(functools.partial(dual_encoder_forward, heads=heads, dim_head=dim_head))
    out_A, out_B = fwd(x_A, x_B, params_A, params_B)
    jax.block_until_ready((out_A, out_B))

    ref_A, ref_B = reference_forward(x_A, x_B, params_A, params_B,
                                     heads=heads, dim_head=dim_head)

    assert out_A.shape == (B, N, dim) and out_B.shape == (B, N, dim)
    assert jnp.all(jnp.isfinite(out_A)) and jnp.all(jnp.isfinite(out_B))
    # tolerance covers approx reciprocal (EUP) + tanh GELU vs exact erf GELU
    assert jnp.allclose(out_A, ref_A, atol=2e-3, rtol=2e-3), \
        float(jnp.max(jnp.abs(out_A - ref_A)))
    assert jnp.allclose(out_B, ref_B, atol=2e-3, rtol=2e-3), \
        float(jnp.max(jnp.abs(out_B - ref_B)))
    print("KERNEL_OK")
</pallas_src>

<mosaic_0001>
module attributes {stable_mosaic.version = 11 : i64} {
  func.func @dual_encoder_kernel(%arg0: i32, %arg1: memref<1x2x8x32xf32, #tpu.memory_space<vmem>>, %arg2: memref<1x2x9x32xf32, #tpu.memory_space<vmem>>, %arg3: memref<1x2x1x64xf32, #tpu.memory_space<vmem>>, %arg4: memref<1x2x32x48xf32, #tpu.memory_space<vmem>>, %arg5: memref<1x2x16x32xf32, #tpu.memory_space<vmem>>, %arg6: memref<1x2x32x48xf32, #tpu.memory_space<vmem>>, %arg7: memref<1x2x16x32xf32, #tpu.memory_space<vmem>>, %arg8: memref<1x2x32x64xf32, #tpu.memory_space<vmem>>, %arg9: memref<1x2x64x32xf32, #tpu.memory_space<vmem>>, %arg10: memref<1x2x8x32xf32, #tpu.memory_space<vmem>>) attributes {dimension_semantics = [#tpu.dimension_semantics<parallel>], iteration_bounds = array<i64: 2>, scalar_prefetch = 0 : i64, scratch_operands = 0 : i64, tpu.core_type = #tpu.core_type<tc>, window_params = [{transform_indices = @transform_0, window_bounds = array<i64: 1, 2, 8, 32>}, {transform_indices = @transform_1, window_bounds = array<i64: 1, 2, 9, 32>}, {transform_indices = @transform_2, window_bounds = array<i64: 1, 2, 1, 64>}, {transform_indices = @transform_3, window_bounds = array<i64: 1, 2, 32, 48>}, {transform_indices = @transform_4, window_bounds = array<i64: 1, 2, 16, 32>}, {transform_indices = @transform_5, window_bounds = array<i64: 1, 2, 32, 48>}, {transform_indices = @transform_6, window_bounds = array<i64: 1, 2, 16, 32>}, {transform_indices = @transform_7, window_bounds = array<i64: 1, 2, 32, 64>}, {transform_indices = @transform_8, window_bounds = array<i64: 1, 2, 64, 32>}, {transform_indices = @transform_9, window_bounds = array<i64: 1, 2, 8, 32>}]} {
    %c0 = arith.constant 0 : index
    %c0_0 = arith.constant 0 : index
    %c0_1 = arith.constant 0 : index
    %c0_2 = arith.constant 0 : index
    %0 = vector.load %arg1[%c0, %c0_0, %c0_1, %c0_2] : memref<1x2x8x32xf32, #tpu.memory_space<vmem>>, vector<1x2x8x32xf32>
    %1 = vector.shape_cast %0 : vector<1x2x8x32xf32> to vector<2x8x32xf32>
    %2 = vector.shape_cast %1 : vector<2x8x32xf32> to vector<16x32xf32>
    %c0_3 = arith.constant 0 : index
    %c0_4 = arith.constant 0 : index
    %c0_5 = arith.constant 0 : index
    %c0_6 = arith.constant 0 : index
    %3 = vector.load %arg2[%c0_3, %c0_4, %c0_5, %c0_6] : memref<1x2x9x32xf32, #tpu.memory_space<vmem>>, vector<1x1x9x32xf32>
    %4 = vector.shape_cast %3 : vector<1x1x9x32xf32> to vector<9x32xf32>
    %5 = vector.extract_strided_slice %4 {offsets = [0, 0], sizes = [1, 32], strides = [1, 1]} : vector<9x32xf32> to vector<1x32xf32>
    %6 = vector.extract_strided_slice %4 {offsets = [1, 0], sizes = [1, 32], strides = [1, 1]} : vector<9x32xf32> to vector<1x32xf32>
    %7 = vector.extract_strided_slice %4 {offsets = [2, 0], sizes = [1, 32], strides = [1, 1]} : vector<9x32xf32> to vector<1x32xf32>
    %8 = vector.extract_strided_slice %4 {offsets = [3, 0], sizes = [1, 32], strides = [1, 1]} : vector<9x32xf32> to vector<1x32xf32>
    %9 = vector.extract_strided_slice %4 {offsets = [4, 0], sizes = [1, 32], strides = [1, 1]} : vector<9x32xf32> to vector<1x32xf32>
    %10 = vector.extract_strided_slice %4 {offsets = [5, 0], sizes = [1, 32], strides = [1, 1]} : vector<9x32xf32> to vector<1x32xf32>
    %11 = vector.extract_strided_slice %4 {offsets = [6, 0], sizes = [1, 32], strides = [1, 1]} : vector<9x32xf32> to vector<1x32xf32>
    %12 = vector.extract_strided_slice %4 {offsets = [7, 0], sizes = [1, 32], strides = [1, 1]} : vector<9x32xf32> to vector<1x32xf32>
    %13 = vector.extract_strided_slice %4 {offsets = [8, 0], sizes = [1, 32], strides = [1, 1]} : vector<9x32xf32> to vector<1x32xf32>
    %c0_7 = arith.constant 0 : index
    %c0_8 = arith.constant 0 : index
    %c0_9 = arith.constant 0 : index
    %c0_10 = arith.constant 0 : index
    %14 = vector.load %arg4[%c0_7, %c0_8, %c0_9, %c0_10] : memref<1x2x32x48xf32, #tpu.memory_space<vmem>>, vector<1x1x32x48xf32>
    %15 = vector.shape_cast %14 : vector<1x1x32x48xf32> to vector<32x48xf32>
    %c0_11 = arith.constant 0 : index
    %c0_12 = arith.constant 0 : index
    %c0_13 = arith.constant 0 : index
    %c0_14 = arith.constant 0 : index
    %16 = vector.load %arg5[%c0_11, %c0_12, %c0_13, %c0_14] : memref<1x2x16x32xf32, #tpu.memory_space<vmem>>, vector<1x1x16x32xf32>
    %17 = vector.shape_cast %16 : vector<1x1x16x32xf32> to vector<16x32xf32>
    %cst = arith.constant dense<0.000000e+00> : vector<16xf32>
    %18 = vector.multi_reduction <add>, %2, %cst [1] : vector<16x32xf32> to vector<16xf32>
    %19 = vector.shape_cast %18 : vector<16xf32> to vector<16x1xf32>
    %cst_15 = arith.constant 3.200000e+01 : f32
    %20 = vector.broadcast %cst_15 : f32 to vector<16x1xf32>
    %21 = arith.divf %19, %20 : vector<16x1xf32>
    %22 = vector.broadcast %21 : vector<16x1xf32> to vector<16x32xf32>
    %23 = arith.subf %2, %22 : vector<16x32xf32>
    %24 = arith.mulf %23, %23 : vector<16x32xf32>
    %cst_16 = arith.constant dense<0.000000e+00> : vector<16xf32>
    %25 = vector.multi_reduction <add>, %24, %cst_16 [1] : vector<16x32xf32> to vector<16xf32>
    %26 = vector.shape_cast %25 : vector<16xf32> to vector<16x1xf32>
    %cst_17 = arith.constant 3.200000e+01 : f32
    %27 = vector.broadcast %cst_17 : f32 to vector<16x1xf32>
    %28 = arith.divf %26, %27 : vector<16x1xf32>
    %29 = vector.broadcast %21 : vector<16x1xf32> to vector<16x32xf32>
    %30 = arith.subf %2, %29 : vector<16x32xf32>
    %cst_18 = arith.constant 9.99999974E-6 : f32
    %31 = vector.broadcast %cst_18 : f32 to vector<16x1xf32>
    %32 = arith.addf %28, %31 : vector<16x1xf32>
    %33 = math.rsqrt %32 : vector<16x1xf32>
    %34 = vector.broadcast %33 : vector<16x1xf32> to vector<16x32xf32>
    %35 = arith.mulf %30, %34 : vector<16x32xf32>
    %36 = vector.broadcast %5 : vector<1x32xf32> to vector<16x32xf32>
    %37 = arith.mulf %35, %36 : vector<16x32xf32>
    %38 = vector.broadcast %6 : vector<1x32xf32> to vector<16x32xf32>
    %39 = arith.addf %37, %38 : vector<16x32xf32>
    %cst_19 = arith.constant dense<0.000000e+00> : vector<16x48xf32>
    %40 = tpu.matmul %39, %15, %cst_19 {dimension_numbers = #tpu.dot_dimension_numbers<[1], [0], [0], [1], [0, 0, 1, 1], [], []>} : vector<16x32xf32>, vector<32x48xf32>, vector<16x48xf32> -> vector<16x48xf32>
    %41 = vector.extract_strided_slice %40 {offsets = [0, 0], sizes = [16, 16], strides = [1, 1]} : vector<16x48xf32> to vector<16x16xf32>
    %42 = vector.shape_cast %41 : vector<16x16xf32> to vector<2x8x16xf32>
    %43 = vector.extract_strided_slice %40 {offsets = [0, 16], sizes = [16, 16], strides = [1, 1]} : vector<16x48xf32> to vector<16x16xf32>
    %44 = vector.shape_cast %43 : vector<16x16xf32> to vector<2x8x16xf32>
    %45 = vector.extract_strided_slice %40 {offsets = [0, 32], sizes = [16, 16], strides = [1, 1]} : vector<16x48xf32> to vector<16x16xf32>
    %46 = vector.shape_cast %45 : vector<16x16xf32> to vector<2x8x16xf32>
    %cst_20 = arith.constant 0.000000e+00 : f32
    %47 = vector.broadcast %cst_20 : f32 to vector<16x32xf32>
    %48 = vector.extract_strided_slice %42 {offsets = [0, 0, 0], sizes = [2, 8, 8], strides = [1, 1, 1]} : vector<2x8x16xf32> to vector<2x8x8xf32>
    %49 = vector.extract_strided_slice %44 {offsets = [0, 0, 0], sizes = [2, 8, 8], strides = [1, 1, 1]} : vector<2x8x16xf32> to vector<2x8x8xf32>
    %50 = vector.extract_strided_slice %46 {offsets = [0, 0, 0], sizes = [2, 8, 8], strides = [1, 1, 1]} : vector<2x8x16xf32> to vector<2x8x8xf32>
    "tpu.trace_start"() <{level = 10 : i32, message = "bid,bjd->bij"}> : () -> ()
    %cst_21 = arith.constant dense<0.000000e+00> : vector<2x8x8xf32>
    %51 = tpu.matmul %48, %49, %cst_21 {dimension_numbers = #tpu.dot_dimension_numbers<[2], [2], [1], [1], [0, 0, 0, 1, 1, 1], [0], [0]>} : vector<2x8x8xf32>, vector<2x8x8xf32>, vector<2x8x8xf32> -> vector<2x8x8xf32>
    "tpu.trace_stop"() : () -> ()
    %cst_22 = arith.constant dense<0xFF800000> : vector<2x8xf32>
    %52 = vector.multi_reduction <maximumf>, %51, %cst_22 [2] : vector<2x8x8xf32> to vector<2x8xf32>
    %53 = vector.shape_cast %52 : vector<2x8xf32> to vector<2x8x1xf32>
    %54 = vector.broadcast %53 : vector<2x8x1xf32> to vector<2x8x8xf32>
    %55 = arith.subf %51, %54 : vector<2x8x8xf32>
    %56 = math.exp %55 : vector<2x8x8xf32>
    %cst_23 = arith.constant dense<0.000000e+00> : vector<2x8xf32>
    %57 = vector.multi_reduction <add>, %56, %cst_23 [2] : vector<2x8x8xf32> to vector<2x8xf32>
    %58 = vector.shape_cast %57 : vector<2x8xf32> to vector<2x8x1xf32>
    %59 = tpu.reciprocal %58 {approx = true} : vector<2x8x1xf32> -> vector<2x8x1xf32>
    %60 = vector.broadcast %59 : vector<2x8x1xf32> to vector<2x8x8xf32>
    %61 = arith.mulf %56, %60 : vector<2x8x8xf32>
    "tpu.trace_start"() <{level = 10 : i32, message = "bij,bjd->bid"}> : () -> ()
    %cst_24 = arith.constant dense<0.000000e+00> : vector<2x8x8xf32>
    %62 = tpu.matmul %61, %50, %cst_24 {dimension_numbers = #tpu.dot_dimension_numbers<[2], [1], [1], [2], [0, 0, 0, 1, 1, 2], [0], [0]>} : vector<2x8x8xf32>, vector<2x8x8xf32>, vector<2x8x8xf32> -> vector<2x8x8xf32>
    "tpu.trace_stop"() : () -> ()
    %63 = vector.shape_cast %62 : vector<2x8x8xf32> to vector<16x8xf32>
    %64 = vector.extract_strided_slice %17 {offsets = [0, 0], sizes = [8, 32], strides = [1, 1]} : vector<16x32xf32> to vector<8x32xf32>
    %cst_25 = arith.constant dense<0.000000e+00> : vector<16x32xf32>
    %65 = tpu.matmul %63, %64, %cst_25 {dimension_numbers = #tpu.dot_dimension_numbers<[1], [0], [0], [1], [0, 0, 1, 1], [], []>} : vector<16x8xf32>, vector<8x32xf32>, vector<16x32xf32> -> vector<16x32xf32>
    %66 = arith.addf %47, %65 : vector<16x32xf32>
    %67 = vector.extract_strided_slice %42 {offsets = [0, 0, 8], sizes = [2, 8, 8], strides = [1, 1, 1]} : vector<2x8x16xf32> to vector<2x8x8xf32>
    %68 = vector.extract_strided_slice %44 {offsets = [0, 0, 8], sizes = [2, 8, 8], strides = [1, 1, 1]} : vector<2x8x16xf32> to vector<2x8x8xf32>
    %69 = vector.extract_strided_slice %46 {offsets = [0, 0, 8], sizes = [2, 8, 8], strides = [1, 1, 1]} : vector<2x8x16xf32> to vector<2x8x8xf32>
    "tpu.trace_start"() <{level = 10 : i32, message = "bid,bjd->bij"}> : () -> ()
    %cst_26 = arith.constant dense<0.000000e+00> : vector<2x8x8xf32>
    %70 = tpu.matmul %67, %68, %cst_26 {dimension_numbers = #tpu.dot_dimension_numbers<[2], [2], [1], [1], [0, 0, 0, 1, 1, 1], [0], [0]>} : vector<2x8x8xf32>, vector<2x8x8xf32>, vector<2x8x8xf32> -> vector<2x8x8xf32>
    "tpu.trace_stop"() : () -> ()
    %cst_27 = arith.constant dense<0xFF800000> : vector<2x8xf32>
    %71 = vector.multi_reduction <maximumf>, %70, %cst_27 [2] : vector<2x8x8xf32> to vector<2x8xf32>
    %72 = vector.shape_cast %71 : vector<2x8xf32> to vector<2x8x1xf32>
    %73 = vector.broadcast %72 : vector<2x8x1xf32> to vector<2x8x8xf32>
    %74 = arith.subf %70, %73 : vector<2x8x8xf32>
    %75 = math.exp %74 : vector<2x8x8xf32>
    %cst_28 = arith.constant dense<0.000000e+00> : vector<2x8xf32>
    %76 = vector.multi_reduction <add>, %75, %cst_28 [2] : vector<2x8x8xf32> to vector<2x8xf32>
    %77 = vector.shape_cast %76 : vector<2x8xf32> to vector<2x8x1xf32>
    %78 = tpu.reciprocal %77 {approx = true} : vector<2x8x1xf32> -> vector<2x8x1xf32>
    %79 = vector.broadcast %78 : vector<2x8x1xf32> to vector<2x8x8xf32>
    %80 = arith.mulf %75, %79 : vector<2x8x8xf32>
    "tpu.trace_start"() <{level = 10 : i32, message = "bij,bjd->bid"}> : () -> ()
    %cst_29 = arith.constant dense<0.000000e+00> : vector<2x8x8xf32>
    %81 = tpu.matmul %80, %69, %cst_29 {dimension_numbers = #tpu.dot_dimension_numbers<[2], [1], [1], [2], [0, 0, 0, 1, 1, 2], [0], [0]>} : vector<2x8x8xf32>, vector<2x8x8xf32>, vector<2x8x8xf32> -> vector<2x8x8xf32>
    "tpu.trace_stop"() : () -> ()
    %82 = vector.shape_cast %81 : vector<2x8x8xf32> to vector<16x8xf32>
    %83 = vector.extract_strided_slice %17 {offsets = [8, 0], sizes = [8, 32], strides = [1, 1]} : vector<16x32xf32> to vector<8x32xf32>
    %cst_30 = arith.constant dense<0.000000e+00> : vector<16x32xf32>
    %84 = tpu.matmul %82, %83, %cst_30 {dimension_numbers = #tpu.dot_dimension_numbers<[1], [0], [0], [1], [0, 0, 1, 1], [], []>} : vector<16x8xf32>, vector<8x32xf32>, vector<16x32xf32> -> vector<16x32xf32>
    %85 = arith.addf %66, %84 : vector<16x32xf32>
    %86 = arith.addf %2, %85 : vector<16x32xf32>
    %87 = vector.broadcast %7 : vector<1x32xf32> to vector<16x32xf32>
    %88 = arith.addf %86, %87 : vector<16x32xf32>
    %c0_31 = arith.constant 0 : index
    %c0_32 = arith.constant 0 : index
    %c0_33 = arith.constant 0 : index
    %c0_34 = arith.constant 0 : index
    %89 = vector.load %arg6[%c0_31, %c0_32, %c0_33, %c0_34] : memref<1x2x32x48xf32, #tpu.memory_space<vmem>>, vector<1x1x32x48xf32>
    %90 = vector.shape_cast %89 : vector<1x1x32x48xf32> to vector<32x48xf32>
    %c0_35 = arith.constant 0 : index
    %c0_36 = arith.constant 0 : index
    %c0_37 = arith.constant 0 : index
    %c0_38 = arith.constant 0 : index
    %91 = vector.load %arg7[%c0_35, %c0_36, %c0_37, %c0_38] : memref<1x2x16x32xf32, #tpu.memory_space<vmem>>, vector<1x1x16x32xf32>
    %92 = vector.shape_cast %91 : vector<1x1x16x32xf32> to vector<16x32xf32>
    %cst_39 = arith.constant dense<0.000000e+00> : vector<16xf32>
    %93 = vector.multi_reduction <add>, %88, %cst_39 [1] : vector<16x32xf32> to vector<16xf32>
    %94 = vector.shape_cast %93 : vector<16xf32> to vector<16x1xf32>
    %cst_40 = arith.constant 3.200000e+01 : f32
    %95 = vector.broadcast %cst_40 : f32 to vector<16x1xf32>
    %96 = arith.divf %94, %95 : vector<16x1xf32>
    %97 = vector.broadcast %96 : vector<16x1xf32> to vector<16x32xf32>
    %98 = arith.subf %88, %97 : vector<16x32xf32>
    %99 = arith.mulf %98, %98 : vector<16x32xf32>
    %cst_41 = arith.constant dense<0.000000e+00> : vector<16xf32>
    %100 = vector.multi_reduction <add>, %99, %cst_41 [1] : vector<16x32xf32> to vector<16xf32>
    %101 = vector.shape_cast %100 : vector<16xf32> to vector<16x1xf32>
    %cst_42 = arith.constant 3.200000e+01 : f32
    %102 = vector.broadcast %cst_42 : f32 to vector<16x1xf32>
    %103 = arith.divf %101, %102 : vector<16x1xf32>
    %104 = vector.broadcast %96 : vector<16x1xf32> to vector<16x32xf32>
    %105 = arith.subf %88, %104 : vector<16x32xf32>
    %cst_43 = arith.constant 9.99999974E-6 : f32
    %106 = vector.broadcast %cst_43 : f32 to vector<16x1xf32>
    %107 = arith.addf %103, %106 : vector<16x1xf32>
    %108 = math.rsqrt %107 : vector<16x1xf32>
    %109 = vector.broadcast %108 : vector<16x1xf32> to vector<16x32xf32>
    %110 = arith.mulf %105, %109 : vector<16x32xf32>
    %111 = vector.broadcast %8 : vector<1x32xf32> to vector<16x32xf32>
    %112 = arith.mulf %110, %111 : vector<16x32xf32>
    %113 = vector.broadcast %9 : vector<1x32xf32> to vector<16x32xf32>
    %114 = arith.addf %112, %113 : vector<16x32xf32>
    %cst_44 = arith.constant dense<0.000000e+00> : vector<16x48xf32>
    %115 = tpu.matmul %114, %90, %cst_44 {dimension_numbers = #tpu.dot_dimension_numbers<[1], [0], [0], [1], [0, 0, 1, 1], [], []>} : vector<16x32xf32>, vector<32x48xf32>, vector<16x48xf32> -> vector<16x48xf32>
    %116 = vector.extract_strided_slice %115 {offsets = [0, 0], sizes = [16, 16], strides = [1, 1]} : vector<16x48xf32> to vector<16x16xf32>
    %117 = vector.shape_cast %116 : vector<16x16xf32> to vector<2x8x16xf32>
    %118 = vector.extract_strided_slice %115 {offsets = [0, 16], sizes = [16, 16], strides = [1, 1]} : vector<16x48xf32> to vector<16x16xf32>
    %119 = vector.shape_cast %118 : vector<16x16xf32> to vector<2x8x16xf32>
    %120 = vector.extract_strided_slice %115 {offsets = [0, 32], sizes = [16, 16], strides = [1, 1]} : vector<16x48xf32> to vector<16x16xf32>
    %121 = vector.shape_cast %120 : vector<16x16xf32> to vector<2x8x16xf32>
    %cst_45 = arith.constant 0.000000e+00 : f32
    %122 = vector.broadcast %cst_45 : f32 to vector<16x32xf32>
    %123 = vector.extract_strided_slice %117 {offsets = [0, 0, 0], sizes = [2, 8, 8], strides = [1, 1, 1]} : vector<2x8x16xf32> to vector<2x8x8xf32>
    %124 = vector.extract_strided_slice %119 {offsets = [0, 0, 0], sizes = [2, 8, 8], strides = [1, 1, 1]} : vector<2x8x16xf32> to vector<2x8x8xf32>
    %125 = vector.extract_strided_slice %121 {offsets = [0, 0, 0], sizes = [2, 8, 8], strides = [1, 1, 1]} : vector<2x8x16xf32> to vector<2x8x8xf32>
    "tpu.trace_start"() <{level = 10 : i32, message = "bid,bjd->bij"}> : () -> ()
    %cst_46 = arith.constant dense<0.000000e+00> : vector<2x8x8xf32>
    %126 = tpu.matmul %123, %124, %cst_46 {dimension_numbers = #tpu.dot_dimension_numbers<[2], [2], [1], [1], [0, 0, 0, 1, 1, 1], [0], [0]>} : vector<2x8x8xf32>, vector<2x8x8xf32>, vector<2x8x8xf32> -> vector<2x8x8xf32>
    "tpu.trace_stop"() : () -> ()
    %cst_47 = arith.constant dense<0xFF800000> : vector<2x8xf32>
    %127 = vector.multi_reduction <maximumf>, %126, %cst_47 [2] : vector<2x8x8xf32> to vector<2x8xf32>
    %128 = vector.shape_cast %127 : vector<2x8xf32> to vector<2x8x1xf32>
    %129 = vector.broadcast %128 : vector<2x8x1xf32> to vector<2x8x8xf32>
    %130 = arith.subf %126, %129 : vector<2x8x8xf32>
    %131 = math.exp %130 : vector<2x8x8xf32>
    %cst_48 = arith.constant dense<0.000000e+00> : vector<2x8xf32>
    %132 = vector.multi_reduction <add>, %131, %cst_48 [2] : vector<2x8x8xf32> to vector<2x8xf32>
    %133 = vector.shape_cast %132 : vector<2x8xf32> to vector<2x8x1xf32>
    %134 = tpu.reciprocal %133 {approx = true} : vector<2x8x1xf32> -> vector<2x8x1xf32>
    %135 = vector.broadcast %134 : vector<2x8x1xf32> to vector<2x8x8xf32>
    %136 = arith.mulf %131, %135 : vector<2x8x8xf32>
    "tpu.trace_start"() <{level = 10 : i32, message = "bij,bjd->bid"}> : () -> ()
    %cst_49 = arith.constant dense<0.000000e+00> : vector<2x8x8xf32>
    %137 = tpu.matmul %136, %125, %cst_49 {dimension_numbers = #tpu.dot_dimension_numbers<[2], [1], [1], [2], [0, 0, 0, 1, 1, 2], [0], [0]>} : vector<2x8x8xf32>, vector<2x8x8xf32>, vector<2x8x8xf32> -> vector<2x8x8xf32>
    "tpu.trace_stop"() : () -> ()
    %138 = vector.shape_cast %137 : vector<2x8x8xf32> to vector<16x8xf32>
    %139 = vector.extract_strided_slice %92 {offsets = [0, 0], sizes = [8, 32], strides = [1, 1]} : vector<16x32xf32> to vector<8x32xf32>
    %cst_50 = arith.constant dense<0.000000e+00> : vector<16x32xf32>
    %140 = tpu.matmul %138, %139, %cst_50 {dimension_numbers = #tpu.dot_dimension_numbers<[1], [0], [0], [1], [0, 0, 1, 1], [], []>} : vector<16x8xf32>, vector<8x32xf32>, vector<16x32xf32> -> vector<16x32xf32>
    %141 = arith.addf %122, %140 : vector<16x32xf32>
    %142 = vector.extract_strided_slice %117 {offsets = [0, 0, 8], sizes = [2, 8, 8], strides = [1, 1, 1]} : vector<2x8x16xf32> to vector<2x8x8xf32>
    %143 = vector.extract_strided_slice %119 {offsets = [0, 0, 8], sizes = [2, 8, 8], strides = [1, 1, 1]} : vector<2x8x16xf32> to vector<2x8x8xf32>
    %144 = vector.extract_strided_slice %121 {offsets = [0, 0, 8], sizes = [2, 8, 8], strides = [1, 1, 1]} : vector<2x8x16xf32> to vector<2x8x8xf32>
    "tpu.trace_start"() <{level = 10 : i32, message = "bid,bjd->bij"}> : () -> ()
    %cst_51 = arith.constant dense<0.000000e+00> : vector<2x8x8xf32>
    %145 = tpu.matmul %142, %143, %cst_51 {dimension_numbers = #tpu.dot_dimension_numbers<[2], [2], [1], [1], [0, 0, 0, 1, 1, 1], [0], [0]>} : vector<2x8x8xf32>, vector<2x8x8xf32>, vector<2x8x8xf32> -> vector<2x8x8xf32>
    "tpu.trace_stop"() : () -> ()
    %cst_52 = arith.constant dense<0xFF800000> : vector<2x8xf32>
    %146 = vector.multi_reduction <maximumf>, %145, %cst_52 [2] : vector<2x8x8xf32> to vector<2x8xf32>
    %147 = vector.shape_cast %146 : vector<2x8xf32> to vector<2x8x1xf32>
    %148 = vector.broadcast %147 : vector<2x8x1xf32> to vector<2x8x8xf32>
    %149 = arith.subf %145, %148 : vector<2x8x8xf32>
    %150 = math.exp %149 : vector<2x8x8xf32>
    %cst_53 = arith.constant dense<0.000000e+00> : vector<2x8xf32>
    %151 = vector.multi_reduction <add>, %150, %cst_53 [2] : vector<2x8x8xf32> to vector<2x8xf32>
    %152 = vector.shape_cast %151 : vector<2x8xf32> to vector<2x8x1xf32>
    %153 = tpu.reciprocal %152 {approx = true} : vector<2x8x1xf32> -> vector<2x8x1xf32>
    %154 = vector.broadcast %153 : vector<2x8x1xf32> to vector<2x8x8xf32>
    %155 = arith.mulf %150, %154 : vector<2x8x8xf32>
    "tpu.trace_start"() <{level = 10 : i32, message = "bij,bjd->bid"}> : () -> ()
    %cst_54 = arith.constant dense<0.000000e+00> : vector<2x8x8xf32>
    %156 = tpu.matmul %155, %144, %cst_54 {dimension_numbers = #tpu.dot_dimension_numbers<[2], [1], [1], [2], [0, 0, 0, 1, 1, 2], [0], [0]>} : vector<2x8x8xf32>, vector<2x8x8xf32>, vector<2x8x8xf32> -> vector<2x8x8xf32>
    "tpu.trace_stop"() : () -> ()
    %157 = vector.shape_cast %156 : vector<2x8x8xf32> to vector<16x8xf32>
    %158 = vector.extract_strided_slice %92 {offsets = [8, 0], sizes = [8, 32], strides = [1, 1]} : vector<16x32xf32> to vector<8x32xf32>
    %cst_55 = arith.constant dense<0.000000e+00> : vector<16x32xf32>
    %159 = tpu.matmul %157, %158, %cst_55 {dimension_numbers = #tpu.dot_dimension_numbers<[1], [0], [0], [1], [0, 0, 1, 1], [], []>} : vector<16x8xf32>, vector<8x32xf32>, vector<16x32xf32> -> vector<16x32xf32>
    %160 = arith.addf %141, %159 : vector<16x32xf32>
    %161 = arith.addf %88, %160 : vector<16x32xf32>
    %162 = vector.broadcast %10 : vector<1x32xf32> to vector<16x32xf32>
    %163 = arith.addf %161, %162 : vector<16x32xf32>
    %c0_56 = arith.constant 0 : index
    %c0_57 = arith.constant 0 : index
    %c0_58 = arith.constant 0 : index
    %c0_59 = arith.constant 0 : index
    %164 = vector.load %arg8[%c0_56, %c0_57, %c0_58, %c0_59] : memref<1x2x32x64xf32, #tpu.memory_space<vmem>>, vector<1x1x32x64xf32>
    %165 = vector.shape_cast %164 : vector<1x1x32x64xf32> to vector<32x64xf32>
    %c0_60 = arith.constant 0 : index
    %c0_61 = arith.constant 0 : index
    %c0_62 = arith.constant 0 : index
    %c0_63 = arith.constant 0 : index
    %166 = vector.load %arg3[%c0_60, %c0_61, %c0_62, %c0_63] : memref<1x2x1x64xf32, #tpu.memory_space<vmem>>, vector<1x1x1x64xf32>
    %167 = vector.shape_cast %166 : vector<1x1x1x64xf32> to vector<1x64xf32>
    %c0_64 = arith.constant 0 : index
    %c0_65 = arith.constant 0 : index
    %c0_66 = arith.constant 0 : index
    %c0_67 = arith.constant 0 : index
    %168 = vector.load %arg9[%c0_64, %c0_65, %c0_66, %c0_67] : memref<1x2x64x32xf32, #tpu.memory_space<vmem>>, vector<1x1x64x32xf32>
    %169 = vector.shape_cast %168 : vector<1x1x64x32xf32> to vector<64x32xf32>
    %cst_68 = arith.constant dense<0.000000e+00> : vector<16xf32>
    %170 = vector.multi_reduction <add>, %163, %cst_68 [1] : vector<16x32xf32> to vector<16xf32>
    %171 = vector.shape_cast %170 : vector<16xf32> to vector<16x1xf32>
    %cst_69 = arith.constant 3.200000e+01 : f32
    %172 = vector.broadcast %cst_69 : f32 to vector<16x1xf32>
    %173 = arith.divf %171, %172 : vector<16x1xf32>
    %174 = vector.broadcast %173 : vector<16x1xf32> to vector<16x32xf32>
    %175 = arith.subf %163, %174 : vector<16x32xf32>
    %176 = arith.mulf %175, %175 : vector<16x32xf32>
    %cst_70 = arith.constant dense<0.000000e+00> : vector<16xf32>
    %177 = vector.multi_reduction <add>, %176, %cst_70 [1] : vector<16x32xf32> to vector<16xf32>
    %178 = vector.shape_cast %177 : vector<16xf32> to vector<16x1xf32>
    %cst_71 = arith.constant 3.200000e+01 : f32
    %179 = vector.broadcast %cst_71 : f32 to vector<16x1xf32>
    %180 = arith.divf %178, %179 : vector<16x1xf32>
    %181 = vector.broadcast %173 : vector<16x1xf32> to vector<16x32xf32>
    %182 = arith.subf %163, %181 : vector<16x32xf32>
    %cst_72 = arith.constant 9.99999974E-6 : f32
    %183 = vector.broadcast %cst_72 : f32 to vector<16x1xf32>
    %184 = arith.addf %180, %183 : vector<16x1xf32>
    %185 = math.rsqrt %184 : vector<16x1xf32>
    %186 = vector.broadcast %185 : vector<16x1xf32> to vector<16x32xf32>
    %187 = arith.mulf %182, %186 : vector<16x32xf32>
    %188 = vector.broadcast %11 : vector<1x32xf32> to vector<16x32xf32>
    %189 = arith.mulf %187, %188 : vector<16x32xf32>
    %190 = vector.broadcast %12 : vector<1x32xf32> to vector<16x32xf32>
    %191 = arith.addf %189, %190 : vector<16x32xf32>
    %cst_73 = arith.constant dense<0.000000e+00> : vector<16x64xf32>
    %192 = tpu.matmul %191, %165, %cst_73 {dimension_numbers = #tpu.dot_dimension_numbers<[1], [0], [0], [1], [0, 0, 1, 1], [], []>} : vector<16x32xf32>, vector<32x64xf32>, vector<16x64xf32> -> vector<16x64xf32>
    %193 = vector.broadcast %167 : vector<1x64xf32> to vector<16x64xf32>
    %194 = arith.addf %192, %193 : vector<16x64xf32>
    %cst_74 = arith.constant 5.000000e-01 : f32
    %195 = vector.broadcast %cst_74 : f32 to vector<16x64xf32>
    %196 = arith.mulf %195, %194 : vector<16x64xf32>
    %cst_75 = arith.constant 4.471500e-02 : f32
    %197 = vector.broadcast %cst_75 : f32 to vector<16x64xf32>
    %198 = arith.mulf %197, %194 : vector<16x64xf32>
    %199 = arith.mulf %198, %194 : vector<16x64xf32>
    %200 = arith.mulf %199, %194 : vector<16x64xf32>
    %201 = arith.addf %194, %200 : vector<16x64xf32>
    %cst_76 = arith.constant 0.797884583 : f32
    %202 = vector.broadcast %cst_76 : f32 to vector<16x64xf32>
    %203 = arith.mulf %202, %201 : vector<16x64xf32>
    %204 = math.tanh %203 : vector<16x64xf32>
    %cst_77 = arith.constant 1.000000e+00 : f32
    %205 = vector.broadcast %cst_77 : f32 to vector<16x64xf32>
    %206 = arith.addf %205, %204 : vector<16x64xf32>
    %207 = arith.mulf %196, %206 : vector<16x64xf32>
    %cst_78 = arith.constant dense<0.000000e+00> : vector<16x32xf32>
    %208 = tpu.matmul %207, %169, %cst_78 {dimension_numbers = #tpu.dot_dimension_numbers<[1], [0], [0], [1], [0, 0, 1, 1], [], []>} : vector<16x64xf32>, vector<64x32xf32>, vector<16x32xf32> -> vector<16x32xf32>
    %209 = arith.addf %163, %208 : vector<16x32xf32>
    %210 = vector.broadcast %13 : vector<1x32xf32> to vector<16x32xf32>
    %211 = arith.addf %209, %210 : vector<16x32xf32>
    %c0_79 = arith.constant 0 : index
    %c1 = arith.constant 1 : index
    %c0_80 = arith.constant 0 : index
    %c0_81 = arith.constant 0 : index
    %212 = vector.load %arg2[%c0_79, %c1, %c0_80, %c0_81] : memref<1x2x9x32xf32, #tpu.memory_space<vmem>>, vector<1x1x9x32xf32>
    %213 = vector.shape_cast %212 : vector<1x1x9x32xf32> to vector<9x32xf32>
    %214 = vector.extract_strided_slice %213 {offsets = [0, 0], sizes = [1, 32], strides = [1, 1]} : vector<9x32xf32> to vector<1x32xf32>
    %215 = vector.extract_strided_slice %213 {offsets = [1, 0], sizes = [1, 32], strides = [1, 1]} : vector<9x32xf32> to vector<1x32xf32>
    %216 = vector.extract_strided_slice %213 {offsets = [2, 0], sizes = [1, 32], strides = [1, 1]} : vector<9x32xf32> to vector<1x32xf32>
    %217 = vector.extract_strided_slice %213 {offsets = [3, 0], sizes = [1, 32], strides = [1, 1]} : vector<9x32xf32> to vector<1x32xf32>
    %218 = vector.extract_strided_slice %213 {offsets = [4, 0], sizes = [1, 32], strides = [1, 1]} : vector<9x32xf32> to vector<1x32xf32>
    %219 = vector.extract_strided_slice %213 {offsets = [5, 0], sizes = [1, 32], strides = [1, 1]} : vector<9x32xf32> to vector<1x32xf32>
    %220 = vector.extract_strided_slice %213 {offsets = [6, 0], sizes = [1, 32], strides = [1, 1]} : vector<9x32xf32> to vector<1x32xf32>
    %221 = vector.extract_strided_slice %213 {offsets = [7, 0], sizes = [1, 32], strides = [1, 1]} : vector<9x32xf32> to vector<1x32xf32>
    %222 = vector.extract_strided_slice %213 {offsets = [8, 0], sizes = [1, 32], strides = [1, 1]} : vector<9x32xf32> to vector<1x32xf32>
    %c0_82 = arith.constant 0 : index
    %c1_83 = arith.constant 1 : index
    %c0_84 = arith.constant 0 : index
    %c0_85 = arith.constant 0 : index
    %223 = vector.load %arg4[%c0_82, %c1_83, %c0_84, %c0_85] : memref<1x2x32x48xf32, #tpu.memory_space<vmem>>, vector<1x1x32x48xf32>
    %224 = vector.shape_cast %223 : vector<1x1x32x48xf32> to vector<32x48xf32>
    %c0_86 = arith.constant 0 : index
    %c1_87 = arith.constant 1 : index
    %c0_88 = arith.constant 0 : index
    %c0_89 = arith.constant 0 : index
    %225 = vector.load %arg5[%c0_86, %c1_87, %c0_88, %c0_89] : memref<1x2x16x32xf32, #tpu.memory_space<vmem>>, vector<1x1x16x32xf32>
    %226 = vector.shape_cast %225 : vector<1x1x16x32xf32> to vector<16x32xf32>
    %cst_90 = arith.constant dense<0.000000e+00> : vector<16xf32>
    %227 = vector.multi_reduction <add>, %211, %cst_90 [1] : vector<16x32xf32> to vector<16xf32>
    %228 = vector.shape_cast %227 : vector<16xf32> to vector<16x1xf32>
    %cst_91 = arith.constant 3.200000e+01 : f32
    %229 = vector.broadcast %cst_91 : f32 to vector<16x1xf32>
    %230 = arith.divf %228, %229 : vector<16x1xf32>
    %231 = vector.broadcast %230 : vector<16x1xf32> to vector<16x32xf32>
    %232 = arith.subf %211, %231 : vector<16x32xf32>
    %233 = arith.mulf %232, %232 : vector<16x32xf32>
    %cst_92 = arith.constant dense<0.000000e+00> : vector<16xf32>
    %234 = vector.multi_reduction <add>, %233, %cst_92 [1] : vector<16x32xf32> to vector<16xf32>
    %235 = vector.shape_cast %234 : vector<16xf32> to vector<16x1xf32>
    %cst_93 = arith.constant 3.200000e+01 : f32
    %236 = vector.broadcast %cst_93 : f32 to vector<16x1xf32>
    %237 = arith.divf %235, %236 : vector<16x1xf32>
    %238 = vector.broadcast %230 : vector<16x1xf32> to vector<16x32xf32>
    %239 = arith.subf %211, %238 : vector<16x32xf32>
    %cst_94 = arith.constant 9.99999974E-6 : f32
    %240 = vector.broadcast %cst_94 : f32 to vector<16x1xf32>
    %241 = arith.addf %237, %240 : vector<16x1xf32>
    %242 = math.rsqrt %241 : vector<16x1xf32>
    %243 = vector.broadcast %242 : vector<16x1xf32> to vector<16x32xf32>
    %244 = arith.mulf %239, %243 : vector<16x32xf32>
    %245 = vector.broadcast %214 : vector<1x32xf32> to vector<16x32xf32>
    %246 = arith.mulf %244, %245 : vector<16x32xf32>
    %247 = vector.broadcast %215 : vector<1x32xf32> to vector<16x32xf32>
    %248 = arith.addf %246, %247 : vector<16x32xf32>
    %cst_95 = arith.constant dense<0.000000e+00> : vector<16x48xf32>
    %249 = tpu.matmul %248, %224, %cst_95 {dimension_numbers = #tpu.dot_dimension_numbers<[1], [0], [0], [1], [0, 0, 1, 1], [], []>} : vector<16x32xf32>, vector<32x48xf32>, vector<16x48xf32> -> vector<16x48xf32>
    %250 = vector.extract_strided_slice %249 {offsets = [0, 0], sizes = [16, 16], strides = [1, 1]} : vector<16x48xf32> to vector<16x16xf32>
    %251 = vector.shape_cast %250 : vector<16x16xf32> to vector<2x8x16xf32>
    %252 = vector.extract_strided_slice %249 {offsets = [0, 16], sizes = [16, 16], strides = [1, 1]} : vector<16x48xf32> to vector<16x16xf32>
    %253 = vector.shape_cast %252 : vector<16x16xf32> to vector<2x8x16xf32>
    %254 = vector.extract_strided_slice %249 {offsets = [0, 32], sizes = [16, 16], strides = [1, 1]} : vector<16x48xf32> to vector<16x16xf32>
    %255 = vector.shape_cast %254 : vector<16x16xf32> to vector<2x8x16xf32>
    %cst_96 = arith.constant 0.000000e+00 : f32
    %256 = vector.broadcast %cst_96 : f32 to vector<16x32xf32>
    %257 = vector.extract_strided_slice %251 {offsets = [0, 0, 0], sizes = [2, 8, 8], strides = [1, 1, 1]} : vector<2x8x16xf32> to vector<2x8x8xf32>
    %258 = vector.extract_strided_slice %253 {offsets = [0, 0, 0], sizes = [2, 8, 8], strides = [1, 1, 1]} : vector<2x8x16xf32> to vector<2x8x8xf32>
    %259 = vector.extract_strided_slice %255 {offsets = [0, 0, 0], sizes = [2, 8, 8], strides = [1, 1, 1]} : vector<2x8x16xf32> to vector<2x8x8xf32>
    "tpu.trace_start"() <{level = 10 : i32, message = "bid,bjd->bij"}> : () -> ()
    %cst_97 = arith.constant dense<0.000000e+00> : vector<2x8x8xf32>
    %260 = tpu.matmul %257, %258, %cst_97 {dimension_numbers = #tpu.dot_dimension_numbers<[2], [2], [1], [1], [0, 0, 0, 1, 1, 1], [0], [0]>} : vector<2x8x8xf32>, vector<2x8x8xf32>, vector<2x8x8xf32> -> vector<2x8x8xf32>
    "tpu.trace_stop"() : () -> ()
    %cst_98 = arith.constant dense<0xFF800000> : vector<2x8xf32>
    %261 = vector.multi_reduction <maximumf>, %260, %cst_98 [2] : vector<2x8x8xf32> to vector<2x8xf32>
    %262 = vector.shape_cast %261 : vector<2x8xf32> to vector<2x8x1xf32>
    %263 = vector.broadcast %262 : vector<2x8x1xf32> to vector<2x8x8xf32>
    %264 = arith.subf %260, %263 : vector<2x8x8xf32>
    %265 = math.exp %264 : vector<2x8x8xf32>
    %cst_99 = arith.constant dense<0.000000e+00> : vector<2x8xf32>
    %266 = vector.multi_reduction <add>, %265, %cst_99 [2] : vector<2x8x8xf32> to vector<2x8xf32>
    %267 = vector.shape_cast %266 : vector<2x8xf32> to vector<2x8x1xf32>
    %268 = tpu.reciprocal %267 {approx = true} : vector<2x8x1xf32> -> vector<2x8x1xf32>
    %269 = vector.broadcast %268 : vector<2x8x1xf32> to vector<2x8x8xf32>
    %270 = arith.mulf %265, %269 : vector<2x8x8xf32>
    "tpu.trace_start"() <{level = 10 : i32, message = "bij,bjd->bid"}> : () -> ()
    %cst_100 = arith.constant dense<0.000000e+00> : vector<2x8x8xf32>
    %271 = tpu.matmul %270, %259, %cst_100 {dimension_numbers = #tpu.dot_dimension_numbers<[2], [1], [1], [2], [0, 0, 0, 1, 1, 2], [0], [0]>} : vector<2x8x8xf32>, vector<2x8x8xf32>, vector<2x8x8xf32> -> vector<2x8x8xf32>
    "tpu.trace_stop"() : () -> ()
    %272 = vector.shape_cast %271 : vector<2x8x8xf32> to vector<16x8xf32>
    %273 = vector.extract_strided_slice %226 {offsets = [0, 0], sizes = [8, 32], strides = [1, 1]} : vector<16x32xf32> to vector<8x32xf32>
    %cst_101 = arith.constant dense<0.000000e+00> : vector<16x32xf32>
    %274 = tpu.matmul %272, %273, %cst_101 {dimension_numbers = #tpu.dot_dimension_numbers<[1], [0], [0], [1], [0, 0, 1, 1], [], []>} : vector<16x8xf32>, vector<8x32xf32>, vector<16x32xf32> -> vector<16x32xf32>
    %275 = arith.addf %256, %274 : vector<16x32xf32>
    %276 = vector.extract_strided_slice %251 {offsets = [0, 0, 8], sizes = [2, 8, 8], strides = [1, 1, 1]} : vector<2x8x16xf32> to vector<2x8x8xf32>
    %277 = vector.extract_strided_slice %253 {offsets = [0, 0, 8], sizes = [2, 8, 8], strides = [1, 1, 1]} : vector<2x8x16xf32> to vector<2x8x8xf32>
    %278 = vector.extract_strided_slice %255 {offsets = [0, 0, 8], sizes = [2, 8, 8], strides = [1, 1, 1]} : vector<2x8x16xf32> to vector<2x8x8xf32>
    "tpu.trace_start"() <{level = 10 : i32, message = "bid,bjd->bij"}> : () -> ()
    %cst_102 = arith.constant dense<0.000000e+00> : vector<2x8x8xf32>
    %279 = tpu.matmul %276, %277, %cst_102 {dimension_numbers = #tpu.dot_dimension_numbers<[2], [2], [1], [1], [0, 0, 0, 1, 1, 1], [0], [0]>} : vector<2x8x8xf32>, vector<2x8x8xf32>, vector<2x8x8xf32> -> vector<2x8x8xf32>
    "tpu.trace_stop"() : () -> ()
    %cst_103 = arith.constant dense<0xFF800000> : vector<2x8xf32>
    %280 = vector.multi_reduction <maximumf>, %279, %cst_103 [2] : vector<2x8x8xf32> to vector<2x8xf32>
    %281 = vector.shape_cast %280 : vector<2x8xf32> to vector<2x8x1xf32>
    %282 = vector.broadcast %281 : vector<2x8x1xf32> to vector<2x8x8xf32>
    %283 = arith.subf %279, %282 : vector<2x8x8xf32>
    %284 = math.exp %283 : vector<2x8x8xf32>
    %cst_104 = arith.constant dense<0.000000e+00> : vector<2x8xf32>
    %285 = vector.multi_reduction <add>, %284, %cst_104 [2] : vector<2x8x8xf32> to vector<2x8xf32>
    %286 = vector.shape_cast %285 : vector<2x8xf32> to vector<2x8x1xf32>
    %287 = tpu.reciprocal %286 {approx = true} : vector<2x8x1xf32> -> vector<2x8x1xf32>
    %288 = vector.broadcast %287 : vector<2x8x1xf32> to vector<2x8x8xf32>
    %289 = arith.mulf %284, %288 : vector<2x8x8xf32>
    "tpu.trace_start"() <{level = 10 : i32, message = "bij,bjd->bid"}> : () -> ()
    %cst_105 = arith.constant dense<0.000000e+00> : vector<2x8x8xf32>
    %290 = tpu.matmul %289, %278, %cst_105 {dimension_numbers = #tpu.dot_dimension_numbers<[2], [1], [1], [2], [0, 0, 0, 1, 1, 2], [0], [0]>} : vector<2x8x8xf32>, vector<2x8x8xf32>, vector<2x8x8xf32> -> vector<2x8x8xf32>
    "tpu.trace_stop"() : () -> ()
    %291 = vector.shape_cast %290 : vector<2x8x8xf32> to vector<16x8xf32>
    %292 = vector.extract_strided_slice %226 {offsets = [8, 0], sizes = [8, 32], strides = [1, 1]} : vector<16x32xf32> to vector<8x32xf32>
    %cst_106 = arith.constant dense<0.000000e+00> : vector<16x32xf32>
    %293 = tpu.matmul %291, %292, %cst_106 {dimension_numbers = #tpu.dot_dimension_numbers<[1], [0], [0], [1], [0, 0, 1, 1], [], []>} : vector<16x8xf32>, vector<8x32xf32>, vector<16x32xf32> -> vector<16x32xf32>
    %294 = arith.addf %275, %293 : vector<16x32xf32>
    %295 = arith.addf %211, %294 : vector<16x32xf32>
    %296 = vector.broadcast %216 : vector<1x32xf32> to vector<16x32xf32>
    %297 = arith.addf %295, %296 : vector<16x32xf32>
    %c0_107 = arith.constant 0 : index
    %c1_108 = arith.constant 1 : index
    %c0_109 = arith.constant 0 : index
    %c0_110 = arith.constant 0 : index
    %298 = vector.load %arg6[%c0_107, %c1_108, %c0_109, %c0_110] : memref<1x2x32x48xf32, #tpu.memory_space<vmem>>, vector<1x1x32x48xf32>
    %299 = vector.shape_cast %298 : vector<1x1x32x48xf32> to vector<32x48xf32>
    %c0_111 = arith.constant 0 : index
    %c1_112 = arith.constant 1 : index
    %c0_113 = arith.constant 0 : index
    %c0_114 = arith.constant 0 : index
    %300 = vector.load %arg7[%c0_111, %c1_112, %c0_113, %c0_114] : memref<1x2x16x32xf32, #tpu.memory_space<vmem>>, vector<1x1x16x32xf32>
    %301 = vector.shape_cast %300 : vector<1x1x16x32xf32> to vector<16x32xf32>
    %cst_115 = arith.constant dense<0.000000e+00> : vector<16xf32>
    %302 = vector.multi_reduction <add>, %297, %cst_115 [1] : vector<16x32xf32> to vector<16xf32>
    %303 = vector.shape_cast %302 : vector<16xf32> to vector<16x1xf32>
    %cst_116 = arith.constant 3.200000e+01 : f32
    %304 = vector.broadcast %cst_116 : f32 to vector<16x1xf32>
    %305 = arith.divf %303, %304 : vector<16x1xf32>
    %306 = vector.broadcast %305 : vector<16x1xf32> to vector<16x32xf32>
    %307 = arith.subf %297, %306 : vector<16x32xf32>
    %308 = arith.mulf %307, %307 : vector<16x32xf32>
    %cst_117 = arith.constant dense<0.000000e+00> : vector<16xf32>
    %309 = vector.multi_reduction <add>, %308, %cst_117 [1] : vector<16x32xf32> to vector<16xf32>
    %310 = vector.shape_cast %309 : vector<16xf32> to vector<16x1xf32>
    %cst_118 = arith.constant 3.200000e+01 : f32
    %311 = vector.broadcast %cst_118 : f32 to vector<16x1xf32>
    %312 = arith.divf %310, %311 : vector<16x1xf32>
    %313 = vector.broadcast %305 : vector<16x1xf32> to vector<16x32xf32>
    %314 = arith.subf %297, %313 : vector<16x32xf32>
    %cst_119 = arith.constant 9.99999974E-6 : f32
    %315 = vector.broadcast %cst_119 : f32 to vector<16x1xf32>
    %316 = arith.addf %312, %315 : vector<16x1xf32>
    %317 = math.rsqrt %316 : vector<16x1xf32>
    %318 = vector.broadcast %317 : vector<16x1xf32> to vector<16x32xf32>
    %319 = arith.mulf %314, %318 : vector<16x32xf32>
    %320 = vector.broadcast %217 : vector<1x32xf32> to vector<16x32xf32>
    %321 = arith.mulf %319, %320 : vector<16x32xf32>
    %322 = vector.broadcast %218 : vector<1x32xf32> to vector<16x32xf32>
    %323 = arith.addf %321, %322 : vector<16x32xf32>
    %cst_120 = arith.constant dense<0.000000e+00> : vector<16x48xf32>
    %324 = tpu.matmul %323, %299, %cst_120 {dimension_numbers = #tpu.dot_dimension_numbers<[1], [0], [0], [1], [0, 0, 1, 1], [], []>} : vector<16x32xf32>, vector<32x48xf32>, vector<16x48xf32> -> vector<16x48xf32>
    %325 = vector.extract_strided_slice %324 {offsets = [0, 0], sizes = [16, 16], strides = [1, 1]} : vector<16x48xf32> to vector<16x16xf32>
    %326 = vector.shape_cast %325 : vector<16x16xf32> to vector<2x8x16xf32>
    %327 = vector.extract_strided_slice %324 {offsets = [0, 16], sizes = [16, 16], strides = [1, 1]} : vector<16x48xf32> to vector<16x16xf32>
    %328 = vector.shape_cast %327 : vector<16x16xf32> to vector<2x8x16xf32>
    %329 = vector.extract_strided_slice %324 {offsets = [0, 32], sizes = [16, 16], strides = [1, 1]} : vector<16x48xf32> to vector<16x16xf32>
    %330 = vector.shape_cast %329 : vector<16x16xf32> to vector<2x8x16xf32>
    %cst_121 = arith.constant 0.000000e+00 : f32
    %331 = vector.broadcast %cst_121 : f32 to vector<16x32xf32>
    %332 = vector.extract_strided_slice %326 {offsets = [0, 0, 0], sizes = [2, 8, 8], strides = [1, 1, 1]} : vector<2x8x16xf32> to vector<2x8x8xf32>
    %333 = vector.extract_strided_slice %328 {offsets = [0, 0, 0], sizes = [2, 8, 8], strides = [1, 1, 1]} : vector<2x8x16xf32> to vector<2x8x8xf32>
    %334 = vector.extract_strided_slice %330 {offsets = [0, 0, 0], sizes = [2, 8, 8], strides = [1, 1, 1]} : vector<2x8x16xf32> to vector<2x8x8xf32>
    "tpu.trace_start"() <{level = 10 : i32, message = "bid,bjd->bij"}> : () -> ()
    %cst_122 = arith.constant dense<0.000000e+00> : vector<2x8x8xf32>
    %335 = tpu.matmul %332, %333, %cst_122 {dimension_numbers = #tpu.dot_dimension_numbers<[2], [2], [1], [1], [0, 0, 0, 1, 1, 1], [0], [0]>} : vector<2x8x8xf32>, vector<2x8x8xf32>, vector<2x8x8xf32> -> vector<2x8x8xf32>
    "tpu.trace_stop"() : () -> ()
    %cst_123 = arith.constant dense<0xFF800000> : vector<2x8xf32>
    %336 = vector.multi_reduction <maximumf>, %335, %cst_123 [2] : vector<2x8x8xf32> to vector<2x8xf32>
    %337 = vector.shape_cast %336 : vector<2x8xf32> to vector<2x8x1xf32>
    %338 = vector.broadcast %337 : vector<2x8x1xf32> to vector<2x8x8xf32>
    %339 = arith.subf %335, %338 : vector<2x8x8xf32>
    %340 = math.exp %339 : vector<2x8x8xf32>
    %cst_124 = arith.constant dense<0.000000e+00> : vector<2x8xf32>
    %341 = vector.multi_reduction <add>, %340, %cst_124 [2] : vector<2x8x8xf32> to vector<2x8xf32>
    %342 = vector.shape_cast %341 : vector<2x8xf32> to vector<2x8x1xf32>
    %343 = tpu.reciprocal %342 {approx = true} : vector<2x8x1xf32> -> vector<2x8x1xf32>
    %344 = vector.broadcast %343 : vector<2x8x1xf32> to vector<2x8x8xf32>
    %345 = arith.mulf %340, %344 : vector<2x8x8xf32>
    "tpu.trace_start"() <{level = 10 : i32, message = "bij,bjd->bid"}> : () -> ()
    %cst_125 = arith.constant dense<0.000000e+00> : vector<2x8x8xf32>
    %346 = tpu.matmul %345, %334, %cst_125 {dimension_numbers = #tpu.dot_dimension_numbers<[2], [1], [1], [2], [0, 0, 0, 1, 1, 2], [0], [0]>} : vector<2x8x8xf32>, vector<2x8x8xf32>, vector<2x8x8xf32> -> vector<2x8x8xf32>
    "tpu.trace_stop"() : () -> ()
    %347 = vector.shape_cast %346 : vector<2x8x8xf32> to vector<16x8xf32>
    %348 = vector.extract_strided_slice %301 {offsets = [0, 0], sizes = [8, 32], strides = [1, 1]} : vector<16x32xf32> to vector<8x32xf32>
    %cst_126 = arith.constant dense<0.000000e+00> : vector<16x32xf32>
    %349 = tpu.matmul %347, %348, %cst_126 {dimension_numbers = #tpu.dot_dimension_numbers<[1], [0], [0], [1], [0, 0, 1, 1], [], []>} : vector<16x8xf32>, vector<8x32xf32>, vector<16x32xf32> -> vector<16x32xf32>
    %350 = arith.addf %331, %349 : vector<16x32xf32>
    %351 = vector.extract_strided_slice %326 {offsets = [0, 0, 8], sizes = [2, 8, 8], strides = [1, 1, 1]} : vector<2x8x16xf32> to vector<2x8x8xf32>
    %352 = vector.extract_strided_slice %328 {offsets = [0, 0, 8], sizes = [2, 8, 8], strides = [1, 1, 1]} : vector<2x8x16xf32> to vector<2x8x8xf32>
    %353 = vector.extract_strided_slice %330 {offsets = [0, 0, 8], sizes = [2, 8, 8], strides = [1, 1, 1]} : vector<2x8x16xf32> to vector<2x8x8xf32>
    "tpu.trace_start"() <{level = 10 : i32, message = "bid,bjd->bij"}> : () -> ()
    %cst_127 = arith.constant dense<0.000000e+00> : vector<2x8x8xf32>
    %354 = tpu.matmul %351, %352, %cst_127 {dimension_numbers = #tpu.dot_dimension_numbers<[2], [2], [1], [1], [0, 0, 0, 1, 1, 1], [0], [0]>} : vector<2x8x8xf32>, vector<2x8x8xf32>, vector<2x8x8xf32> -> vector<2x8x8xf32>
    "tpu.trace_stop"() : () -> ()
    %cst_128 = arith.constant dense<0xFF800000> : vector<2x8xf32>
    %355 = vector.multi_reduction <maximumf>, %354, %cst_128 [2] : vector<2x8x8xf32> to vector<2x8xf32>
    %356 = vector.shape_cast %355 : vector<2x8xf32> to vector<2x8x1xf32>
    %357 = vector.broadcast %356 : vector<2x8x1xf32> to vector<2x8x8xf32>
    %358 = arith.subf %354, %357 : vector<2x8x8xf32>
    %359 = math.exp %358 : vector<2x8x8xf32>
    %cst_129 = arith.constant dense<0.000000e+00> : vector<2x8xf32>
    %360 = vector.multi_reduction <add>, %359, %cst_129 [2] : vector<2x8x8xf32> to vector<2x8xf32>
    %361 = vector.shape_cast %360 : vector<2x8xf32> to vector<2x8x1xf32>
    %362 = tpu.reciprocal %361 {approx = true} : vector<2x8x1xf32> -> vector<2x8x1xf32>
    %363 = vector.broadcast %362 : vector<2x8x1xf32> to vector<2x8x8xf32>
    %364 = arith.mulf %359, %363 : vector<2x8x8xf32>
    "tpu.trace_start"() <{level = 10 : i32, message = "bij,bjd->bid"}> : () -> ()
    %cst_130 = arith.constant dense<0.000000e+00> : vector<2x8x8xf32>
    %365 = tpu.matmul %364, %353, %cst_130 {dimension_numbers = #tpu.dot_dimension_numbers<[2], [1], [1], [2], [0, 0, 0, 1, 1, 2], [0], [0]>} : vector<2x8x8xf32>, vector<2x8x8xf32>, vector<2x8x8xf32> -> vector<2x8x8xf32>
    "tpu.trace_stop"() : () -> ()
    %366 = vector.shape_cast %365 : vector<2x8x8xf32> to vector<16x8xf32>
    %367 = vector.extract_strided_slice %301 {offsets = [8, 0], sizes = [8, 32], strides = [1, 1]} : vector<16x32xf32> to vector<8x32xf32>
    %cst_131 = arith.constant dense<0.000000e+00> : vector<16x32xf32>
    %368 = tpu.matmul %366, %367, %cst_131 {dimension_numbers = #tpu.dot_dimension_numbers<[1], [0], [0], [1], [0, 0, 1, 1], [], []>} : vector<16x8xf32>, vector<8x32xf32>, vector<16x32xf32> -> vector<16x32xf32>
    %369 = arith.addf %350, %368 : vector<16x32xf32>
    %370 = arith.addf %297, %369 : vector<16x32xf32>
    %371 = vector.broadcast %219 : vector<1x32xf32> to vector<16x32xf32>
    %372 = arith.addf %370, %371 : vector<16x32xf32>
    %c0_132 = arith.constant 0 : index
    %c1_133 = arith.constant 1 : index
    %c0_134 = arith.constant 0 : index
    %c0_135 = arith.constant 0 : index
    %373 = vector.load %arg8[%c0_132, %c1_133, %c0_134, %c0_135] : memref<1x2x32x64xf32, #tpu.memory_space<vmem>>, vector<1x1x32x64xf32>
    %374 = vector.shape_cast %373 : vector<1x1x32x64xf32> to vector<32x64xf32>
    %c0_136 = arith.constant 0 : index
    %c1_137 = arith.constant 1 : index
    %c0_138 = arith.constant 0 : index
    %c0_139 = arith.constant 0 : index
    %375 = vector.load %arg3[%c0_136, %c1_137, %c0_138, %c0_139] : memref<1x2x1x64xf32, #tpu.memory_space<vmem>>, vector<1x1x1x64xf32>
    %376 = vector.shape_cast %375 : vector<1x1x1x64xf32> to vector<1x64xf32>
    %c0_140 = arith.constant 0 : index
    %c1_141 = arith.constant 1 : index
    %c0_142 = arith.constant 0 : index
    %c0_143 = arith.constant 0 : index
    %377 = vector.load %arg9[%c0_140, %c1_141, %c0_142, %c0_143] : memref<1x2x64x32xf32, #tpu.memory_space<vmem>>, vector<1x1x64x32xf32>
    %378 = vector.shape_cast %377 : vector<1x1x64x32xf32> to vector<64x32xf32>
    %cst_144 = arith.constant dense<0.000000e+00> : vector<16xf32>
    %379 = vector.multi_reduction <add>, %372, %cst_144 [1] : vector<16x32xf32> to vector<16xf32>
    %380 = vector.shape_cast %379 : vector<16xf32> to vector<16x1xf32>
    %cst_145 = arith.constant 3.200000e+01 : f32
    %381 = vector.broadcast %cst_145 : f32 to vector<16x1xf32>
    %382 = arith.divf %380, %381 : vector<16x1xf32>
    %383 = vector.broadcast %382 : vector<16x1xf32> to vector<16x32xf32>
    %384 = arith.subf %372, %383 : vector<16x32xf32>
    %385 = arith.mulf %384, %384 : vector<16x32xf32>
    %cst_146 = arith.constant dense<0.000000e+00> : vector<16xf32>
    %386 = vector.multi_reduction <add>, %385, %cst_146 [1] : vector<16x32xf32> to vector<16xf32>
    %387 = vector.shape_cast %386 : vector<16xf32> to vector<16x1xf32>
    %cst_147 = arith.constant 3.200000e+01 : f32
    %388 = vector.broadcast %cst_147 : f32 to vector<16x1xf32>
    %389 = arith.divf %387, %388 : vector<16x1xf32>
    %390 = vector.broadcast %382 : vector<16x1xf32> to vector<16x32xf32>
    %391 = arith.subf %372, %390 : vector<16x32xf32>
    %cst_148 = arith.constant 9.99999974E-6 : f32
    %392 = vector.broadcast %cst_148 : f32 to vector<16x1xf32>
    %393 = arith.addf %389, %392 : vector<16x1xf32>
    %394 = math.rsqrt %393 : vector<16x1xf32>
    %395 = vector.broadcast %394 : vector<16x1xf32> to vector<16x32xf32>
    %396 = arith.mulf %391, %395 : vector<16x32xf32>
    %397 = vector.broadcast %220 : vector<1x32xf32> to vector<16x32xf32>
    %398 = arith.mulf %396, %397 : vector<16x32xf32>
    %399 = vector.broadcast %221 : vector<1x32xf32> to vector<16x32xf32>
    %400 = arith.addf %398, %399 : vector<16x32xf32>
    %cst_149 = arith.constant dense<0.000000e+00> : vector<16x64xf32>
    %401 = tpu.matmul %400, %374, %cst_149 {dimension_numbers = #tpu.dot_dimension_numbers<[1], [0], [0], [1], [0, 0, 1, 1], [], []>} : vector<16x32xf32>, vector<32x64xf32>, vector<16x64xf32> -> vector<16x64xf32>
    %402 = vector.broadcast %376 : vector<1x64xf32> to vector<16x64xf32>
    %403 = arith.addf %401, %402 : vector<16x64xf32>
    %cst_150 = arith.constant 5.000000e-01 : f32
    %404 = vector.broadcast %cst_150 : f32 to vector<16x64xf32>
    %405 = arith.mulf %404, %403 : vector<16x64xf32>
    %cst_151 = arith.constant 4.471500e-02 : f32
    %406 = vector.broadcast %cst_151 : f32 to vector<16x64xf32>
    %407 = arith.mulf %406, %403 : vector<16x64xf32>
    %408 = arith.mulf %407, %403 : vector<16x64xf32>
    %409 = arith.mulf %408, %403 : vector<16x64xf32>
    %410 = arith.addf %403, %409 : vector<16x64xf32>
    %cst_152 = arith.constant 0.797884583 : f32
    %411 = vector.broadcast %cst_152 : f32 to vector<16x64xf32>
    %412 = arith.mulf %411, %410 : vector<16x64xf32>
    %413 = math.tanh %412 : vector<16x64xf32>
    %cst_153 = arith.constant 1.000000e+00 : f32
    %414 = vector.broadcast %cst_153 : f32 to vector<16x64xf32>
    %415 = arith.addf %414, %413 : vector<16x64xf32>
    %416 = arith.mulf %405, %415 : vector<16x64xf32>
    %cst_154 = arith.constant dense<0.000000e+00> : vector<16x32xf32>
    %417 = tpu.matmul %416, %378, %cst_154 {dimension_numbers = #tpu.dot_dimension_numbers<[1], [0], [0], [1], [0, 0, 1, 1], [], []>} : vector<16x64xf32>, vector<64x32xf32>, vector<16x32xf32> -> vector<16x32xf32>
    %418 = arith.addf %372, %417 : vector<16x32xf32>
    %419 = vector.broadcast %222 : vector<1x32xf32> to vector<16x32xf32>
    %420 = arith.addf %418, %419 : vector<16x32xf32>
    %421 = vector.shape_cast %420 : vector<16x32xf32> to vector<2x8x32xf32>
    %c0_155 = arith.constant 0 : index
    %c0_156 = arith.constant 0 : index
    %c0_157 = arith.constant 0 : index
    %c0_158 = arith.constant 0 : index
    %422 = vector.load %arg10[%c0_155, %c0_156, %c0_157, %c0_158] : memref<1x2x8x32xf32, #tpu.memory_space<vmem>>, vector<1x2x8x32xf32>
    %423 = vector.shape_cast %422 : vector<1x2x8x32xf32> to vector<2x8x32xf32>
    %424 = vector.shape_cast %421 : vector<2x8x32xf32> to vector<1x2x8x32xf32>
    tpu.vector_store %arg10[%c0_155, %c0_156, %c0_157, %c0_158], %424 {strides = array<i32>} : memref<1x2x8x32xf32, #tpu.memory_space<vmem>>, vector<1x2x8x32xf32>,
    return
  }
  func.func @transform_0(%arg0: i32) -> (i32, i32, i32, i32) {
    %c0_i32 = arith.constant 0 : i32
    %c0_i32_0 = arith.constant 0 : i32
    %c0_i32_1 = arith.constant 0 : i32
    %c0_i32_2 = arith.constant 0 : i32
    return %arg0, %c0_i32, %c0_i32_0, %c0_i32_1 : i32, i32, i32, i32
  }
  func.func @transform_1(%arg0: i32) -> (i32, i32, i32, i32) {
    %c0_i32 = arith.constant 0 : i32
    %c0_i32_0 = arith.constant 0 : i32
    %c0_i32_1 = arith.constant 0 : i32
    %c0_i32_2 = arith.constant 0 : i32
    return %arg0, %c0_i32, %c0_i32_0, %c0_i32_1 : i32, i32, i32, i32
  }
  func.func @transform_2(%arg0: i32) -> (i32, i32, i32, i32) {
    %c0_i32 = arith.constant 0 : i32
    %c0_i32_0 = arith.constant 0 : i32
    %c0_i32_1 = arith.constant 0 : i32
    %c0_i32_2 = arith.constant 0 : i32
    return %arg0, %c0_i32, %c0_i32_0, %c0_i32_1 : i32, i32, i32, i32
  }
  func.func @transform_3(%arg0: i32) -> (i32, i32, i32, i32) {
    %c0_i32 = arith.constant 0 : i32
    %c0_i32_0 = arith.constant 0 : i32
    %c0_i32_1 = arith.constant 0 : i32
    %c0_i32_2 = arith.constant 0 : i32
    return %arg0, %c0_i32, %c0_i32_0, %c0_i32_1 : i32, i32, i32, i32
  }
  func.func @transform_4(%arg0: i32) -> (i32, i32, i32, i32) {
    %c0_i32 = arith.constant 0 : i32
    %c0_i32_0 = arith.constant 0 : i32
    %c0_i32_1 = arith.constant 0 : i32
    %c0_i32_2 = arith.constant 0 : i32
    return %arg0, %c0_i32, %c0_i32_0, %c0_i32_1 : i32, i32, i32, i32
  }
  func.func @transform_5(%arg0: i32) -> (i32, i32, i32, i32) {
    %c0_i32 = arith.constant 0 : i32
    %c0_i32_0 = arith.constant 0 : i32
    %c0_i32_1 = arith.constant 0 : i32
    %c0_i32_2 = arith.constant 0 : i32
    return %arg0, %c0_i32, %c0_i32_0, %c0_i32_1 : i32, i32, i32, i32
  }
  func.func @transform_6(%arg0: i32) -> (i32, i32, i32, i32) {
    %c0_i32 = arith.constant 0 : i32
    %c0_i32_0 = arith.constant 0 : i32
    %c0_i32_1 = arith.constant 0 : i32
    %c0_i32_2 = arith.constant 0 : i32
    return %arg0, %c0_i32, %c0_i32_0, %c0_i32_1 : i32, i32, i32, i32
  }
  func.func @transform_7(%arg0: i32) -> (i32, i32, i32, i32) {
    %c0_i32 = arith.constant 0 : i32
    %c0_i32_0 = arith.constant 0 : i32
    %c0_i32_1 = arith.constant 0 : i32
    %c0_i32_2 = arith.constant 0 : i32
    return %arg0, %c0_i32, %c0_i32_0, %c0_i32_1 : i32, i32, i32, i32
  }
  func.func @transform_8(%arg0: i32) -> (i32, i32, i32, i32) {
    %c0_i32 = arith.constant 0 : i32
    %c0_i32_0 = arith.constant 0 : i32
    %c0_i32_1 = arith.constant 0 : i32
    %c0_i32_2 = arith.constant 0 : i32
    return %arg0, %c0_i32, %c0_i32_0, %c0_i32_1 : i32, i32, i32, i32
  }
  func.func @transform_9(%arg0: i32) -> (i32, i32, i32, i32) {
    %c0_i32 = arith.constant 0 : i32
    %c0_i32_0 = arith.constant 0 : i32
    %c0_i32_1 = arith.constant 0 : i32
    %c0_i32_2 = arith.constant 0 : i32
    return %arg0, %c0_i32, %c0_i32_0, %c0_i32_1 : i32, i32, i32, i32
  }
}

</mosaic_0001>

<bundles_post_ra>
// kernel: dual_encoder_forward.1
= control target key start
LH: loop header
LB: loop body
LE: loop exit
PB: predicated region body
PF: predicated region fallthrough
CT: control target
= control target key end

     0   :  { %s5821_s30 = smov 0   ;;  %s6413_s0 = inlined_call_operand.vmem [shape: f32[2,2,8,32], index: 0, kind: input, shape index: {}]   ;;  %s6414_s1 = inlined_call_operand.vmem [shape: f32[2,2,9,32], index: 1, kind: input, shape index: {}]   ;;  %s6415_s2 = inlined_call_operand.vmem [shape: f32[2,2,1,64], index: 2, kind: input, shape index: {}]   ;;  %s6416_s3 = inlined_call_operand.vmem [shape: f32[2,2,32,48], index: 3, kind: input, shape index: {}]   ;;  %s6417_s4 = inlined_call_operand.vmem [shape: f32[2,2,16,32], index: 4, kind: input, shape index: {}]   ;;  %s6418_s5 = inlined_call_operand.vmem [shape: f32[2,2,32,48], index: 5, kind: input, shape index: {}]   ;;  %s6419_s6 = inlined_call_operand.vmem [shape: f32[2,2,16,32], index: 6, kind: input, shape index: {}]   ;;  %s6420_s7 = inlined_call_operand.vmem [shape: f32[2,2,32,64], index: 7, kind: input, shape index: {}]   ;;  %s6421_s8 = inlined_call_operand.vmem [shape: f32[2,2,64,32], index: 8, kind: input, shape index: {}]   ;;  %s6422_s9 = inlined_call_operand.vmem [shape: f32[2,2,8,32], index: 9, kind: output, shape index: {}]  }
   0x1 LB: > { %s4963_s10 = sadd.s32 4294967295, %s5762_s30   ;;  %p4967_p0 = scmp.ge.s32.totalorder %s5762_s30, 1  ;;  %s5762_s30 = sphi %s5821_s30, %s19_s30  }
   0x2   : > { %p366_p1 = scmp.lt.s32.totalorder %s5762_s30, 3 }
   0x4   : > { %p367_p2 = pnand %p4967_p0, %p366_p1 }
   0x5   : > { %p441_p3 = scmp.lt.s32.totalorder (!%p367_p2), %s4963_s10, 1  ;;  %vm500_vm0 = vcmask (!%p367_p2), 261120   ;;  %v528_v22 = vlaneseq (!%p367_p2)  ;;  %v5764_v41 = vmov (!%p367_p2), 0.0   ;;  %vm5765_vm1 = vmmov (!%p367_p2), 0   ;;  %s5766_s23 = smov (!%p367_p2), 112  }
   0x6   : > { %370 = sbr.rel (%p367_p2) target bundleno = 10133 (0x2795), region = 56  ;;  %5274 = vmatprep.subr.mxu0 (!%p367_p2), %v5764_v41  ;;  %5276 = vmatprep.mubr.msk.f32.mxu0 (!%p367_p2), %vm5765_vm1, %v5764_v41  ;;  %vm624_vm2 = vcmask (!%p367_p2), 64512   ;;  %s5767_s24 = smov (!%p367_p2), 96   ;;  %vm2559_vm3 = vcmask (!%p367_p2), 523264  }
   0x7   : > { %v5865_v26 = vshrl.u32 (!%p367_p2), %v528_v22, 7  ;;  %s5768_s25 = smov (!%p367_p2), 104   ;;  %s5769_s26 = smov (!%p367_p2), 120  }
   0x8   : > { %s5770_s27 = smov (!%p367_p2), 88  }
   0x9   : > { %v530_v28 = vsub.s32 (!%p367_p2), 0, %v5865_v26  ;;  %v536_v30 = vsub.s32 (!%p367_p2), 1, %v5865_v26 }
   0xd   : > { %s6424_s10 = smov (!%p441_p3, %s4963_s10), 1 }
   0xe   : > { %s5100_s11 = sshll.u32 %s6424_s10, 4  ;;  %s5850_s15 = sshll.u32 %s6424_s10, 6 }
   0xf   : > { %s445_s14 = scalar_lea.vmem %s6413_s0, %s5100_s11  ;;  %s5856_s18 = scalar_lea.vmem %s6416_s3, %s5850_s15 }
  0x10   : > { %v5837_v0 = vld [vmem:[%s445_s14] sm:$0xff]  ;;  %v5839_v1 = vld [vmem:[%s445_s14 + $0x8] sm:$0xff]  ;;  %v496_v16 = vld [vmem:[%s5856_s18 + $0x10] sm:$0xff]  ;;  %s5863_s19 = sshll.u32 %s6424_s10, 5  ;;  %s5993_s16 = scalar_lea.vmem %s6418_s5, %s5850_s15 }
  0x11   : > { %v501_v2 = vsel %vm500_vm0, %v5837_v0, 0.0  ;;  %v504_v3 = vsel %vm500_vm0, %v5839_v1, 0.0  ;;  %v494_v14 = vld [vmem:[%s5856_s18] sm:$0xff]  ;;  %v495_v15 = vld [vmem:[%s5856_s18 + $0x8] sm:$0xff]  ;;  %v497_v18 = vld [vmem:[%s5856_s18 + $0x18] sm:$0xff]  ;;  %s5871_s22 = scalar_lea.vmem %s6414_s1, %s5863_s19  ;;  %s5960_s12 = scalar_lea.vmem %s6417_s4, %s5863_s19 }
  0x12   : > { %502 = vadd.xlane.f32.xlu0 %v501_v2  ;;  %v5557_v17 = vpack.c.bf16 %v495_v15, %v494_v14  ;;  %v5561_v19 = vpack.c.bf16 %v497_v18, %v496_v16  ;;  %v5875_v29 = vld [vmem:[%s5871_s22] sm:$0xff]  ;;  %s6080_s21 = scalar_lea.vmem %s6419_s6, %s5863_s19  ;;  %s6110_s29 = scalar_lea.vmem %s6420_s7, %s5850_s15 }
  0x13   : > { %v531_v31 = vrot.slane %v5875_v29, %v530_v28  ;;  %v537_v34 = vrot.slane %v5875_v29, %v536_v30  ;;  %s5107_s15 = sshll.u32 %s6424_s10, 7  ;;  %s4972_s20 = sshll.u32 %s6424_s10, 1 }
  0x14   : > { %5558 = vmatprep.subr.bf16.mxu1 %v5557_v17  ;;  %s6130_s17 = scalar_lea.vmem %s6421_s8, %s5107_s15  ;;  %s6145_s15 = scalar_lea.vmem %s6415_s2, %s4972_s20 }
  0x15   : > { %5560 = vmatpush3.bf16.msra.mxu1 %v5557_v17 }
  0x16   : > { %505 = vadd.xlane.f32.xlu0 %v504_v3  ;;  %5562 = vmatprep.subr.bf16.mxu1 %v5561_v19 }
  0x19   : > { %5564 = vmatpush3.bf16.msra.mxu1 %v5561_v19 }
  0x1a   : > { %5264 = vmatprep.subr.mxu1 %v5764_v41 }
  0x9f   : > { %v503_v4 = vpop.xlane.xlu0 %502 }
  0xa0   : > { %v508_v5 = vmul.f32 0.03125, %v503_v4 }
  0xa2   : > { %v510_v6 = vsub.f32 %v5837_v0, %v508_v5 }
  0xa3   : > { %v506_v7 = vpop.xlane.xlu0 %505 }
  0xa4   : > { %v509_v8 = vmul.f32 0.03125, %v506_v7  ;;  %v512_v9 = vmul.f32 %v510_v6, %v510_v6 }
  0xa6   : > { %v511_v10 = vsub.f32 %v5839_v1, %v509_v8  ;;  %v514_v11 = vsel %vm500_vm0, %v512_v9, 0.0 }
  0xa7   : > { %515 = vadd.xlane.f32.xlu1 %v514_v11 }
  0xa8   : > { %v513_v12 = vmul.f32 %v511_v10, %v511_v10 }
  0xaa   : > { %v517_v13 = vsel %vm500_vm0, %v513_v12, 0.0 }
  0xab   : > { %518 = vadd.xlane.f32.xlu1 %v517_v13 }
 0x134   : > { %v516_v20 = vpop.xlane.xlu1 %515 }
 0x135   : > { %v520_v21 = vmul.f32 0.03125, %v516_v20 }
 0x137   : > { %v522_v23 = vadd.f32 1e-05, %v520_v21 }
 0x138   : > { %v519_v24 = vpop.xlane.xlu1 %518 }
 0x139   : > { %5660 = vrsqrt.f32 %v522_v23  ;;  %v521_v25 = vmul.f32 0.03125, %v519_v24 }
 0x13b   : > { %v523_v27 = vadd.f32 1e-05, %v521_v25 }
 0x13d   : > { %5662 = vrsqrt.f32 %v523_v27 }
 0x143   : > { %v5661_v32 = vpop.eup %5660 }
 0x144   : > { %v526_v33 = vmul.f32 %v5661_v32, %v510_v6 }
 0x146   : > { %v532_v35 = vmul.f32 %v531_v31, %v526_v33 }
 0x147   : > { %v5663_v36 = vpop.eup %5662 }
 0x148   : > { %v527_v37 = vmul.f32 %v5663_v36, %v511_v10  ;;  %v538_v38 = vadd.f32 %v537_v34, %v532_v35 }
 0x14a   : > { %v533_v39 = vmul.f32 %v531_v31, %v527_v37  ;;  %5261 = vmatprep.mubr.msk.f32.mxu1 %vm500_vm0, %v538_v38 }
 0x14c   : > { %v539_v40 = vadd.f32 %v537_v34, %v533_v39 }
 0x14e   : > { %5262 = vmatmul.mubr.msk.f32.vlgmr.msra.gmra.mrb[0].mxu1 %vm500_vm0, %v539_v40 }
 0x14f   : > { %5266 = vmatprep.mubr.msk.f32.mxu1 %vm5765_vm1, %v5764_v41 }
 0x221   : > { %v5892_v42 = vpop.f32.mrb[0].mxu1 }
 0x222   : > { %700 = vrot.lane.b32.xlu1 %v5892_v42, %s5766_s23  ;;  %v5896_v43 = vpop.f32.mrb[1].mxu1 }
 0x223   : > { %622 = vrot.lane.b32.xlu0 %v5896_v43, %s5766_s23 }
 0x294   : > { %v701_v45 = vpop.permute.xlu1 %700 }
 0x295   : > { %v623_v44 = vpop.permute.xlu0 %622 }
 0x296   : > { %5265 = vmatpush3.xpose.msk.msra.mxu1 %vm624_vm2, %v623_v44 }
 0x297   : > { %5269 = vmatprep.subr.mxu1 %v5764_v41 }
 0x299   : > { %5267 = vmatmul.mubr.msk.f32.vlgmr.msra.gmra.mrb[2].mxu1 %vm624_vm2, %v5896_v43 }
 0x29a   : > { %5270 = vmatpush3.xpose.msk.msra.mxu1 %vm624_vm2, %v701_v45  ;;  %5271 = vmatprep.mubr.msk.f32.mxu1 %vm5765_vm1, %v5764_v41 }
 0x29b   : > { %5279 = vmatprep.subr.mxu1 %v5764_v41 }
 0x29d   : > { %5272 = vmatmul.mubr.msk.f32.vlgmr.msra.gmra.mrb[4].mxu1 %vm624_vm2, %v5892_v42 }
 0x29e   : > { %5281 = vmatprep.mubr.msk.f32.mxu1 %vm5765_vm1, %v5764_v41 }
 0x36c   : > { %v695_v46 = vpop.f32.mrb[2].mxu1 }
 0x36d   : > { %v5268_v47 = vpop.f32.mrb[3].mxu1  ;;  %v776_v48 = vsel %vm624_vm2, %v695_v46, -inf }
 0x36e   : > { %777 = vmax.xlane.f32.xlu1 %v776_v48 }
 0x370   : > { %v772_v49 = vpop.f32.mrb[4].mxu1 }
 0x371   : > { %v5273_v50 = vpop.f32.mrb[5].mxu1  ;;  %v779_v51 = vsel %vm624_vm2, %v772_v49, -inf }
 0x372   : > { %780 = vmax.xlane.f32.xlu0 %v779_v51  ;;  %v1446_v51 = vsub.s32 2, %v5865_v26 }
 0x37f   : > { %874 = vrot.lane.b32.xlu1 %v5892_v42, %s5767_s24 }
 0x383   : > { %952 = vrot.lane.b32.xlu1 %v5896_v43, %s5768_s25 }
 0x387   : > { %1030 = vrot.lane.b32.xlu1 %v5892_v42, %s5768_s25 }
 0x388   : > { %798 = vrot.lane.b32.xlu0 %v5896_v43, %s5767_s24 }
 0x3fb   : > { %v778_v52 = vpop.xlane.xlu1 %777 }
 0x3fc   : > { %v782_v53 = vsub.f32 %v695_v46, %v778_v52  ;;  %v498_v46 = vld [vmem:[%s5960_s12] sm:$0xff]  ;;  %v1447_v52 = vrot.slane %v5875_v29, %v1446_v51 }
 0x3fe   : > { %v784_v54 = vmul.f32 1.442695, %v782_v53 }
 0x3ff   : > { %v875_v55 = vpop.permute.xlu1 %874  ;;  %v781_v56 = vpop.xlane.xlu0 %780 }
 0x400   : > { %5664 = vpow2.f32 %v784_v54  ;;  %v783_v57 = vsub.f32 %v772_v49, %v781_v56  ;;  %5280 = vmatpush3.msra.mxu1 %v875_v55 }
 0x401   : > { %5289 = vmatprep.subr.mxu1 %v5764_v41 }
 0x402   : > { %v786_v58 = vmul.f32 1.442695, %v783_v57 }
 0x403   : > { %v799_v59 = vpop.permute.xlu0 %798  ;;  %v953_v2 = vpop.permute.xlu1 %952 }
 0x404   : > { %5666 = vpow2.f32 %v786_v58  ;;  %5275 = vmatpush3.msra.mxu0 %v799_v59 }
 0x405   : > { %5284 = vmatprep.subr.mxu0 %v5764_v41 }
 0x407   : > { %v1031_v3 = vpop.permute.xlu1 %1030 }
 0x40a   : > { %v5665_v60 = vpop.eup %5664 }
 0x40b   : > { %v788_v61 = vsel %vm624_vm2, %v5665_v60, 0.0 }
 0x40c   : > { %789 = vadd.xlane.f32.xlu0 %v788_v61 }
 0x40e   : > { %v5667_v62 = vpop.eup %5666 }
 0x40f   : > { %v791_v63 = vsel %vm624_vm2, %v5667_v62, 0.0 }
 0x410   : > { %792 = vadd.xlane.f32.xlu1 %v791_v63 }
 0x421   : > { %1028 = vrot.lane.b32.xlu1 %v5892_v42, %s5769_s26 }
 0x422   : > { %950 = vrot.lane.b32.xlu0 %v5896_v43, %s5769_s26 }
 0x499   : > { %v790_v4 = vpop.xlane.xlu0 %789 }
 0x49a   : > { %5668 = vrcp.f32 %v790_v4 }
 0x49d   : > { %v793_v5 = vpop.xlane.xlu1 %792  ;;  %v951_v10 = vpop.permute.xlu0 %950 }
 0x49e   : > { %5670 = vrcp.f32 %v793_v5 }
 0x4a1   : > { %v1029_v11 = vpop.permute.xlu1 %1028 }
 0x4a4   : > { %v5669_v6 = vpop.eup %5668 }
 0x4a5   : > { %v796_v7 = vmul.f32 %v5669_v6, %v5665_v60 }
 0x4a7   : > { %5277 = vmatmul.mubr.msk.f32.vlgmr.msra.gmra.mrb[0].mxu0 %vm624_vm2, %v796_v7  ;;  %v1450_v7 = vld [vmem:[%s5993_s16] sm:$0xff] }
 0x4a8   : > { %v5671_v8 = vpop.eup %5670  ;;  %5285 = vmatpush3.xpose.msk.msra.mxu0 %vm624_vm2, %v953_v2  ;;  %5286 = vmatprep.mubr.msk.f32.mxu0 %vm5765_vm1, %v5764_v41 }
 0x4a9   : > { %v797_v9 = vmul.f32 %v5671_v8, %v5667_v62  ;;  %5294 = vmatprep.subr.mxu0 %v5764_v41  ;;  %v1451_v8 = vld [vmem:[%s5993_s16 + $0x8] sm:$0xff] }
 0x4ab   : > { %5282 = vmatmul.mubr.msk.f32.vlgmr.msra.gmra.mrb[6].mxu1 %vm624_vm2, %v797_v9  ;;  %5287 = vmatmul.mubr.msk.f32.vlgmr.msra.gmra.mrb[2].mxu0 %vm624_vm2, %v951_v10  ;;  %v5565_v9 = vpack.c.bf16 %v1451_v8, %v1450_v7  ;;  %v1452_v10 = vld [vmem:[%s5993_s16 + $0x10] sm:$0xff] }
 0x4ac   : > { %5290 = vmatpush3.xpose.msk.msra.mxu1 %vm624_vm2, %v1031_v3  ;;  %5291 = vmatprep.mubr.msk.f32.mxu1 %vm5765_vm1, %v5764_v41 }
 0x4ad   : > { %5299 = vmatprep.subr.mxu1 %v5764_v41  ;;  %5296 = vmatprep.mubr.msk.f32.mxu0 %vm5765_vm1, %v5764_v41 }
 0x4af   : > { %5292 = vmatmul.mubr.msk.f32.vlgmr.msra.gmra.mrb[8].mxu1 %vm624_vm2, %v1029_v11  ;;  %v1453_v11 = vld [vmem:[%s5993_s16 + $0x18] sm:$0xff] }
 0x4b0   : > { %5301 = vmatprep.mubr.msk.f32.mxu1 %vm5765_vm1, %v5764_v41 }
 0x57a   : > { %v870_v12 = vpop.f32.mrb[0].mxu0 }
 0x57b   : > { %v5278_v13 = vpop.f32.mrb[1].mxu0 }
 0x57e   : > { %v946_v14 = vpop.f32.mrb[6].mxu1  ;;  %v1024_v15 = vpop.f32.mrb[2].mxu0 }
 0x57f   : > { %v5283_v16 = vpop.f32.mrb[7].mxu1  ;;  %v5288_v17 = vpop.f32.mrb[3].mxu0  ;;  %v1106_v18 = vsel %vm624_vm2, %v1024_v15, -inf }
 0x580   : > { %1107 = vmax.xlane.f32.xlu0 %v1106_v18 }
 0x582   : > { %v1102_v19 = vpop.f32.mrb[8].mxu1 }
 0x583   : > { %v5293_v20 = vpop.f32.mrb[9].mxu1  ;;  %v1109_v21 = vsel %vm624_vm2, %v1102_v19, -inf }
 0x584   : > { %1110 = vmax.xlane.f32.xlu1 %v1109_v21  ;;  %v1490_v20 = vsub.s32 4, %v5865_v26 }
 0x595   : > { %1204 = vrot.lane.b32.xlu1 %v5892_v42, %s5770_s27 }
 0x60d   : > { %v1108_v22 = vpop.xlane.xlu0 %1107 }
 0x60e   : > { %v1112_v23 = vsub.f32 %v1024_v15, %v1108_v22 }
 0x610   : > { %v1114_v24 = vmul.f32 1.442695, %v1112_v23 }
 0x611   : > { %v1111_v25 = vpop.xlane.xlu1 %1110 }
 0x612   : > { %5672 = vpow2.f32 %v1114_v24  ;;  %v1113_v27 = vsub.f32 %v1102_v19, %v1111_v25  ;;  %v1484_v19 = vsub.s32 3, %v5865_v26 }
 0x614   : > { %v1116_v31 = vmul.f32 1.442695, %v1113_v27  ;;  %v1485_v21 = vrot.slane %v5875_v29, %v1484_v19  ;;  %v1491_v27 = vrot.slane %v5875_v29, %v1490_v20 }
 0x615   : > { %v1205_v32 = vpop.permute.xlu1 %1204 }
 0x616   : > { %5674 = vpow2.f32 %v1116_v31  ;;  %5300 = vmatpush3.msra.mxu1 %v1205_v32 }
 0x617   : > { %5566 = vmatprep.subr.bf16.mxu1 %v5565_v9 }
 0x61c   : > { %v5673_v33 = vpop.eup %5672 }
 0x61d   : > { %v1118_v34 = vsel %vm624_vm2, %v5673_v33, 0.0 }
 0x61e   : > { %1119 = vadd.xlane.f32.xlu0 %v1118_v34 }
 0x620   : > { %v5675_v35 = vpop.eup %5674 }
 0x621   : > { %v1121_v36 = vsel %vm624_vm2, %v5675_v35, 0.0 }
 0x622   : > { %1122 = vadd.xlane.f32.xlu0 %v1121_v36 }
 0x638   : > { %1128 = vrot.lane.b32.xlu0 %v5896_v43, %s5770_s27  ;;  %v499_v43 = vld [vmem:[%s5960_s12 + $0x8] sm:$0xff] }
 0x6ab   : > { %v1120_v37 = vpop.xlane.xlu0 %1119 }
 0x6ac   : > { %5676 = vrcp.f32 %v1120_v37 }
 0x6af   : > { %v1123_v38 = vpop.xlane.xlu0 %1122 }
 0x6b0   : > { %5678 = vrcp.f32 %v1123_v38 }
 0x6b3   : > { %v1129_v39 = vpop.permute.xlu0 %1128 }
 0x6b4   : > { %5295 = vmatpush3.msra.mxu0 %v1129_v39 }
 0x6b5   : > { %5304 = vmatprep.subr.mxu0 %v499_v43 }
 0x6b6   : > { %v5677_v40 = vpop.eup %5676 }
 0x6b7   : > { %v1126_v42 = vmul.f32 %v5677_v40, %v5673_v33 }
 0x6b9   : > { %5297 = vmatmul.mubr.msk.f32.vlgmr.msra.gmra.mrb[4].mxu0 %vm624_vm2, %v1126_v42 }
 0x6ba   : > { %v5679_v44 = vpop.eup %5678  ;;  %5305 = vmatpush3.msra.mxu0 %v499_v43 }
 0x6bb   : > { %v1127_v45 = vmul.f32 %v5679_v44, %v5675_v35  ;;  %5309 = vmatprep.subr.mxu0 %v498_v46 }
 0x6bd   : > { %5302 = vmatmul.mubr.msk.f32.vlgmr.msra.gmra.mrb[10].mxu1 %vm624_vm2, %v1127_v45 }
 0x6be   : > { %5568 = vmatpush3.bf16.msra.mxu1 %v5565_v9 }
 0x78c   : > { %v1200_v47 = vpop.f32.mrb[4].mxu0 }
 0x78d   : > { %v5298_v48 = vpop.f32.mrb[5].mxu0  ;;  %5306 = vmatprep.mubr.msk.f32.mxu0 %vm624_vm2, %v1200_v47 }
 0x790   : > { %v1276_v49 = vpop.f32.mrb[10].mxu1 }
 0x791   : > { %v5303_v50 = vpop.f32.mrb[11].mxu1  ;;  %5307 = vmatmul.mubr.msk.f32.vlgmr.msra.gmra.mrb[6].mxu0 %vm624_vm2, %v1276_v49 }
 0x792   : > { %5310 = vmatpush3.msra.mxu0 %v498_v46  ;;  %5311 = vmatprep.mubr.msk.f32.mxu0 %vm624_vm2, %v870_v12  ;;  %v5569_v12 = vpack.c.bf16 %v1453_v11, %v1452_v10 }
 0x793   : > { %5325 = vmatprep.subr.mxu0 %v5764_v41 }
 0x794   : > { %5570 = vmatprep.subr.bf16.mxu1 %v5569_v12 }
 0x795   : > { %5572 = vmatpush3.bf16.msra.mxu1 %v5569_v12 }
 0x796   : > { %5330 = vmatprep.subr.mxu1 %v5764_v41 }
 0x799   : > { %5312 = vmatmul.mubr.msk.f32.vlgmr.msra.gmra.mrb[6].mxu0 %vm624_vm2, %v946_v14 }
 0x79a   : > { %5327 = vmatprep.mubr.msk.f32.mxu0 %vm5765_vm1, %v5764_v41 }
 0x86c   : > { %v5313_v53 = vpop.f32.mrb[6].mxu0 }
 0x86d   : > { %v1443_v54 = vadd.f32 %v5313_v53, %v5839_v1  ;;  %v1433_v55 = vpop.f32.mrb[7].mxu0 }
 0x86e   : > { %v1442_v56 = vadd.f32 %v1433_v55, %v5837_v0 }
 0x86f   : > { %v5977_v57 = vadd.f32 %v1447_v52, %v1443_v54 }
 0x870   : > { %v5979_v58 = vadd.f32 %v1447_v52, %v1442_v56 }
 0x871   : > { %v1459_v59 = vsel %vm500_vm0, %v5977_v57, 0.0 }
 0x872   : > { %1460 = vadd.xlane.f32.xlu0 %v1459_v59  ;;  %v1456_v60 = vsel %vm500_vm0, %v5979_v58, 0.0 }
 0x873   : > { %1457 = vadd.xlane.f32.xlu1 %v1456_v60 }
 0x8ff   : > { %v1461_v61 = vpop.xlane.xlu0 %1460 }
 0x900   : > { %v1463_v62 = vmul.f32 0.03125, %v1461_v61  ;;  %v1458_v63 = vpop.xlane.xlu1 %1457 }
 0x901   : > { %v1462_v1 = vmul.f32 0.03125, %v1458_v63 }
 0x902   : > { %v1465_v2 = vsub.f32 %v5977_v57, %v1463_v62 }
 0x903   : > { %v1464_v0 = vsub.f32 %v5979_v58, %v1462_v1 }
 0x904   : > { %v1467_v3 = vmul.f32 %v1465_v2, %v1465_v2 }
 0x905   : > { %v1466_v4 = vmul.f32 %v1464_v0, %v1464_v0 }
 0x906   : > { %v1471_v5 = vsel %vm500_vm0, %v1467_v3, 0.0 }
 0x907   : > { %1472 = vadd.xlane.f32.xlu1 %v1471_v5  ;;  %v1468_v6 = vsel %vm500_vm0, %v1466_v4, 0.0 }
 0x908   : > { %1469 = vadd.xlane.f32.xlu0 %v1468_v6 }
 0x994   : > { %v1473_v13 = vpop.xlane.xlu1 %1472 }
 0x995   : > { %v1475_v14 = vmul.f32 0.03125, %v1473_v13  ;;  %v1470_v15 = vpop.xlane.xlu0 %1469 }
 0x996   : > { %v1474_v16 = vmul.f32 0.03125, %v1470_v15 }
 0x997   : > { %v1477_v17 = vadd.f32 1e-05, %v1475_v14 }
 0x998   : > { %v1476_v18 = vadd.f32 1e-05, %v1474_v16 }
 0x999   : > { %5680 = vrsqrt.f32 %v1477_v17 }
 0x99a   : > { %5682 = vrsqrt.f32 %v1476_v18 }
 0x9a3   : > { %v5681_v22 = vpop.eup %5680 }
 0x9a4   : > { %v5683_v23 = vpop.eup %5682  ;;  %v1481_v24 = vmul.f32 %v5681_v22, %v1465_v2 }
 0x9a5   : > { %v1480_v25 = vmul.f32 %v5683_v23, %v1464_v0 }
 0x9a6   : > { %v1487_v31 = vmul.f32 %v1485_v21, %v1481_v24 }
 0x9a7   : > { %v1486_v32 = vmul.f32 %v1485_v21, %v1480_v25 }
 0x9a8   : > { %v1493_v34 = vadd.f32 %v1491_v27, %v1487_v31 }
 0x9a9   : > { %v1492_v33 = vadd.f32 %v1491_v27, %v1486_v32 }
 0x9ab   : > { %5322 = vmatprep.mubr.msk.f32.mxu1 %vm500_vm0, %v1492_v33 }
 0x9ac   : > { %5323 = vmatmul.mubr.msk.f32.vlgmr.msra.gmra.mrb[12].mxu1 %vm500_vm0, %v1493_v34 }
 0x9ad   : > { %5332 = vmatprep.mubr.msk.f32.mxu1 %vm5765_vm1, %v5764_v41 }
 0xa7f   : > { %v6012_v35 = vpop.f32.mrb[12].mxu1 }
 0xa80   : > { %1653 = vrot.lane.b32.xlu1 %v6012_v35, %s5766_s23  ;;  %v6016_v36 = vpop.f32.mrb[13].mxu1 }
 0xa81   : > { %1576 = vrot.lane.b32.xlu0 %v6016_v36, %s5766_s23 }
 0xaf2   : > { %v1654_v37 = vpop.permute.xlu1 %1653 }
 0xaf3   : > { %5331 = vmatpush3.xpose.msk.msra.mxu1 %vm624_vm2, %v1654_v37  ;;  %v1577_v38 = vpop.permute.xlu0 %1576 }
 0xaf4   : > { %5326 = vmatpush3.xpose.msk.msra.mxu0 %vm624_vm2, %v1577_v38  ;;  %5340 = vmatprep.subr.mxu1 %v5764_v41 }
 0xaf5   : > { %5335 = vmatprep.subr.mxu0 %v5764_v41 }
 0xaf6   : > { %5333 = vmatmul.mubr.msk.f32.vlgmr.msra.gmra.mrb[14].mxu1 %vm624_vm2, %v6012_v35 }
 0xaf7   : > { %5328 = vmatmul.mubr.msk.f32.vlgmr.msra.gmra.mrb[8].mxu0 %vm624_vm2, %v6016_v36  ;;  %5342 = vmatprep.mubr.msk.f32.mxu1 %vm5765_vm1, %v5764_v41 }
 0xaf8   : > { %5337 = vmatprep.mubr.msk.f32.mxu0 %vm5765_vm1, %v5764_v41 }
 0xbc9   : > { %v1725_v39 = vpop.f32.mrb[14].mxu1 }
 0xbca   : > { %v1648_v40 = vpop.f32.mrb[8].mxu0  ;;  %v5334_v42 = vpop.f32.mrb[15].mxu1  ;;  %v1732_v44 = vsel %vm624_vm2, %v1725_v39, -inf }
 0xbcb   : > { %v5329_v45 = vpop.f32.mrb[9].mxu0  ;;  %1733 = vmax.xlane.f32.xlu0 %v1732_v44  ;;  %v1729_v43 = vsel %vm624_vm2, %v1648_v40, -inf  ;;  %v1454_v44 = vld [vmem:[%s6080_s21] sm:$0xff] }
 0xbcc   : > { %1730 = vmax.xlane.f32.xlu1 %v1729_v43 }
 0xbdd   : > { %1827 = vrot.lane.b32.xlu1 %v6012_v35, %s5767_s24 }
 0xbe1   : > { %1905 = vrot.lane.b32.xlu1 %v6016_v36, %s5768_s25  ;;  %1751 = vrot.lane.b32.xlu0 %v6016_v36, %s5767_s24 }
 0xbe5   : > { %1983 = vrot.lane.b32.xlu1 %v6012_v35, %s5768_s25 }
 0xc58   : > { %v1734_v46 = vpop.xlane.xlu0 %1733 }
 0xc59   : > { %v1736_v47 = vsub.f32 %v1725_v39, %v1734_v46  ;;  %v1731_v48 = vpop.xlane.xlu1 %1730 }
 0xc5a   : > { %v1735_v49 = vsub.f32 %v1648_v40, %v1731_v48  ;;  %v2399_v48 = vsub.s32 5, %v5865_v26 }
 0xc5b   : > { %v1739_v50 = vmul.f32 1.442695, %v1736_v47 }
 0xc5c   : > { %v1737_v52 = vmul.f32 1.442695, %v1735_v49  ;;  %v1752_v53 = vpop.permute.xlu0 %1751  ;;  %v2400_v49 = vrot.slane %v5875_v29, %v2399_v48 }
 0xc5d   : > { %5684 = vpow2.f32 %v1739_v50  ;;  %v1828_v54 = vpop.permute.xlu1 %1827  ;;  %5336 = vmatpush3.msra.mxu0 %v1752_v53 }
 0xc5e   : > { %5686 = vpow2.f32 %v1737_v52  ;;  %5341 = vmatpush3.msra.mxu1 %v1828_v54  ;;  %5345 = vmatprep.subr.mxu0 %v5764_v41 }
 0xc5f   : > { %5350 = vmatprep.subr.mxu1 %v5764_v41 }
 0xc61   : > { %v1906_v61 = vpop.permute.xlu1 %1905 }
 0xc65   : > { %v1984_v62 = vpop.permute.xlu1 %1983 }
 0xc67   : > { %v5685_v55 = vpop.eup %5684 }
 0xc68   : > { %v5687_v56 = vpop.eup %5686  ;;  %v1744_v59 = vsel %vm624_vm2, %v5685_v55, 0.0 }
 0xc69   : > { %1745 = vadd.xlane.f32.xlu1 %v1744_v59  ;;  %v1741_v60 = vsel %vm624_vm2, %v5687_v56, 0.0 }
 0xc6a   : > { %1742 = vadd.xlane.f32.xlu0 %v1741_v60 }
 0xc7a   : > { %1981 = vrot.lane.b32.xlu1 %v6012_v35, %s5769_s26 }
 0xc80   : > { %1903 = vrot.lane.b32.xlu0 %v6016_v36, %s5769_s26 }
 0xcf6   : > { %v1746_v63 = vpop.xlane.xlu1 %1745 }
 0xcf7   : > { %5688 = vrcp.f32 %v1746_v63  ;;  %v1743_v1 = vpop.xlane.xlu0 %1742 }
 0xcf8   : > { %5690 = vrcp.f32 %v1743_v1 }
 0xcfa   : > { %v1982_v5 = vpop.permute.xlu1 %1981 }
 0xcfb   : > { %v1904_v6 = vpop.permute.xlu0 %1903 }
 0xd01   : > { %v5689_v2 = vpop.eup %5688 }
 0xd02   : > { %v5691_v0 = vpop.eup %5690  ;;  %v1750_v3 = vmul.f32 %v5689_v2, %v5685_v55 }
 0xd03   : > { %v1749_v4 = vmul.f32 %v5691_v0, %v5687_v56 }
 0xd04   : > { %5343 = vmatmul.mubr.msk.f32.vlgmr.msra.gmra.mrb[16].mxu1 %vm624_vm2, %v1750_v3 }
 0xd05   : > { %5351 = vmatpush3.xpose.msk.msra.mxu1 %vm624_vm2, %v1984_v62  ;;  %5338 = vmatmul.mubr.msk.f32.vlgmr.msra.gmra.mrb[10].mxu0 %vm624_vm2, %v1749_v4 }
 0xd06   : > { %5346 = vmatpush3.xpose.msk.msra.mxu0 %vm624_vm2, %v1906_v61  ;;  %5352 = vmatprep.mubr.msk.f32.mxu1 %vm5765_vm1, %v5764_v41 }
 0xd07   : > { %5347 = vmatprep.mubr.msk.f32.mxu0 %vm5765_vm1, %v5764_v41  ;;  %5360 = vmatprep.subr.mxu1 %v5764_v41 }
 0xd08   : > { %5353 = vmatmul.mubr.msk.f32.vlgmr.msra.gmra.mrb[18].mxu1 %vm624_vm2, %v1982_v5  ;;  %5355 = vmatprep.subr.mxu0 %v5764_v41  ;;  %v2403_v5 = vld [vmem:[%s6110_s29] sm:$0xff] }
 0xd09   : > { %5348 = vmatmul.mubr.msk.f32.vlgmr.msra.gmra.mrb[12].mxu0 %vm624_vm2, %v1904_v6  ;;  %5362 = vmatprep.mubr.msk.f32.mxu1 %vm5765_vm1, %v5764_v41  ;;  %v2404_v6 = vld [vmem:[%s6110_s29 + $0x8] sm:$0xff] }
 0xd0a   : > { %5357 = vmatprep.mubr.msk.f32.mxu0 %vm5765_vm1, %v5764_v41 }
 0xdd7   : > { %v1899_v7 = vpop.f32.mrb[16].mxu1 }
 0xdd8   : > { %v1823_v8 = vpop.f32.mrb[10].mxu0  ;;  %v5344_v9 = vpop.f32.mrb[17].mxu1 }
 0xdd9   : > { %v5339_v10 = vpop.f32.mrb[11].mxu0  ;;  %v2406_v9 = vld [vmem:[%s6110_s29 + $0x18] sm:$0xff] }
 0xddb   : > { %v2055_v11 = vpop.f32.mrb[18].mxu1 }
 0xddc   : > { %v1977_v12 = vpop.f32.mrb[12].mxu0  ;;  %v5354_v13 = vpop.f32.mrb[19].mxu1  ;;  %v2062_v14 = vsel %vm624_vm2, %v2055_v11, -inf }
 0xddd   : > { %v5349_v15 = vpop.f32.mrb[13].mxu0  ;;  %2063 = vmax.xlane.f32.xlu1 %v2062_v14  ;;  %v2059_v16 = vsel %vm624_vm2, %v1977_v12, -inf }
 0xdde   : > { %2060 = vmax.xlane.f32.xlu0 %v2059_v16 }
 0xdee   : > { %2157 = vrot.lane.b32.xlu1 %v6012_v35, %s5770_s27 }
 0xe6a   : > { %v2064_v17 = vpop.xlane.xlu1 %2063 }
 0xe6b   : > { %v2066_v18 = vsub.f32 %v2055_v11, %v2064_v17  ;;  %v2061_v21 = vpop.xlane.xlu0 %2060  ;;  %v2444_v17 = vsub.s32 6, %v5865_v26 }
 0xe6c   : > { %v2065_v22 = vsub.f32 %v1977_v12, %v2061_v21 }
 0xe6d   : > { %v2069_v23 = vmul.f32 1.442695, %v2066_v18  ;;  %v2450_v18 = vsub.s32 7, %v5865_v26  ;;  %v2445_v21 = vrot.slane %v5875_v29, %v2444_v17  ;;  %v5088_v26 = vld [vmem:[%s6130_s17 + $0x60] sm:$0xff] }
 0xe6e   : > { %v2067_v24 = vmul.f32 1.442695, %v2065_v22  ;;  %v2158_v25 = vpop.permute.xlu1 %2157 }
 0xe6f   : > { %5692 = vpow2.f32 %v2069_v23  ;;  %5361 = vmatpush3.msra.mxu1 %v2158_v25 }
 0xe70   : > { %5694 = vpow2.f32 %v2067_v24 }
 0xe79   : > { %v5693_v27 = vpop.eup %5692 }
 0xe7a   : > { %v2074_v31 = vsel %vm624_vm2, %v5693_v27, 0.0  ;;  %v5695_v32 = vpop.eup %5694 }
 0xe7b   : > { %2075 = vadd.xlane.f32.xlu0 %v2074_v31  ;;  %v2071_v33 = vsel %vm624_vm2, %v5695_v32, 0.0 }
 0xe7f   : > { %2072 = vadd.xlane.f32.xlu0 %v2071_v33 }
 0xe95   : > { %2081 = vrot.lane.b32.xlu0 %v6016_v36, %s5770_s27  ;;  %v1455_v36 = vld [vmem:[%s6080_s21 + $0x8] sm:$0xff] }
 0xf08   : > { %v2076_v34 = vpop.xlane.xlu0 %2075 }
 0xf09   : > { %5696 = vrcp.f32 %v2076_v34 }
 0xf0c   : > { %v2073_v35 = vpop.xlane.xlu0 %2072 }
 0xf0d   : > { %5698 = vrcp.f32 %v2073_v35  ;;  %v2409_v35 = vld [vmem:[%s6130_s17 + $0x8] sm:$0xff] }
 0xf10   : > { %v2082_v37 = vpop.permute.xlu0 %2081 }
 0xf11   : > { %5356 = vmatpush3.msra.mxu0 %v2082_v37 }
 0xf12   : > { %5365 = vmatprep.subr.mxu0 %v1455_v36 }
 0xf13   : > { %v5697_v38 = vpop.eup %5696 }
 0xf14   : > { %v2080_v39 = vmul.f32 %v5697_v38, %v5693_v27  ;;  %v2451_v27 = vrot.slane %v5875_v29, %v2450_v18  ;;  %v2408_v29 = vld [vmem:[%s6130_s17] sm:$0xff]  ;;  %v2410_v38 = vld [vmem:[%s6130_s17 + $0x10] sm:$0xff] }
 0xf15   : > { %v5581_v37 = vpack.c.bf16 %v2409_v35, %v2408_v29  ;;  %v5031_v29 = vld [vmem:[%s5856_s18 + $0x20] sm:$0xff]  ;;  %v5032_v35 = vld [vmem:[%s5856_s18 + $0x28] sm:$0xff] }
 0xf16   : > { %5363 = vmatmul.mubr.msk.f32.vlgmr.msra.gmra.mrb[20].mxu1 %vm624_vm2, %v2080_v39  ;;  %v2411_v39 = vld [vmem:[%s6130_s17 + $0x18] sm:$0xff] }
 0xf17   : > { %v5699_v40 = vpop.eup %5698 }
 0xf18   : > { %v2079_v42 = vmul.f32 %v5699_v40, %v5695_v32  ;;  %v5585_v40 = vpack.c.bf16 %v2411_v39, %v2410_v38  ;;  %v5033_v38 = vld [vmem:[%s5856_s18 + $0x30] sm:$0xff]  ;;  %v5034_v39 = vld [vmem:[%s5856_s18 + $0x38] sm:$0xff] }
 0xf1a   : > { %5358 = vmatmul.mubr.msk.f32.vlgmr.msra.gmra.mrb[14].mxu0 %vm624_vm2, %v2079_v42  ;;  %v2412_v42 = vld [vmem:[%s6130_s17 + $0x20] sm:$0xff] }
 0xf1b   : > { %5366 = vmatpush3.msra.mxu0 %v1455_v36  ;;  %v2413_v36 = vld [vmem:[%s6130_s17 + $0x28] sm:$0xff] }
 0xf1c   : > { %5370 = vmatprep.subr.mxu0 %v1454_v44 }
 0xfe9   : > { %v2229_v45 = vpop.f32.mrb[20].mxu1 }
 0xfea   : > { %v5364_v43 = vpop.f32.mrb[21].mxu1 }
 0xfeb   : > { %v2415_v43 = vld [vmem:[%s6130_s17 + $0x38] sm:$0xff] }
 0xfed   : > { %v2153_v46 = vpop.f32.mrb[14].mxu0 }
 0xfee   : > { %v5359_v47 = vpop.f32.mrb[15].mxu0  ;;  %5367 = vmatprep.mubr.msk.f32.mxu0 %vm624_vm2, %v2153_v46 }
 0xfef   : > { %5368 = vmatmul.mubr.msk.f32.vlgmr.msra.gmra.mrb[16].mxu0 %vm624_vm2, %v2229_v45  ;;  %v2414_v45 = vld [vmem:[%s6130_s17 + $0x30] sm:$0xff]  ;;  %v5023_v47 = vld [vmem:[%s6145_s15] ss:$0 sm:$0xff] }
 0xff0   : > { %5371 = vmatpush3.msra.mxu0 %v1454_v44  ;;  %5372 = vmatprep.mubr.msk.f32.mxu0 %vm624_vm2, %v1823_v8  ;;  %v2405_v8 = vld [vmem:[%s6110_s29 + $0x10] sm:$0xff]  ;;  %v5589_v44 = vpack.c.bf16 %v2413_v36, %v2412_v42  ;;  %v5593_v46 = vpack.c.bf16 %v2415_v43, %v2414_v45 }
 0xff1   : > { %v5577_v10 = vpack.c.bf16 %v2406_v9, %v2405_v8  ;;  %5582 = vmatprep.subr.bf16.mxu0 %v5581_v37 }
 0xff7   : > { %5373 = vmatmul.mubr.msk.f32.vlgmr.msra.gmra.mrb[16].mxu0 %vm624_vm2, %v1899_v7  ;;  %v5573_v7 = vpack.c.bf16 %v2404_v6, %v2403_v5 }
 0xff8   : > { %5584 = vmatpush3.bf16.msra.mxu0 %v5581_v37  ;;  %v5597_v37 = vpack.c.bf16 %v5032_v35, %v5031_v29 }
 0xff9   : > { %5574 = vmatprep.subr.bf16.mxu1 %v5573_v7  ;;  %5586 = vmatprep.subr.bf16.mxu0 %v5585_v40 }
 0xffa   : > { %5576 = vmatpush3.bf16.msra.mxu1 %v5573_v7 }
 0xffb   : > { %5578 = vmatprep.subr.bf16.mxu1 %v5577_v10 }
 0xffc   : > { %5588 = vmatpush3.bf16.msra.mxu0 %v5585_v40  ;;  %v5601_v40 = vpack.c.bf16 %v5034_v39, %v5033_v38 }
 0xffd   : > { %5590 = vmatprep.subr.bf16.mxu0 %v5589_v44 }
 0xffe   : > { %5580 = vmatpush3.bf16.msra.mxu1 %v5577_v10  ;;  %v5028_v10 = vld [vmem:[%s5871_s22 + $0x8] ss:$0 sm:$0xff] }
 0xfff   : > { %5598 = vmatprep.subr.bf16.mxu1 %v5597_v37 }
0x1000   : > { %5592 = vmatpush3.bf16.msra.mxu0 %v5589_v44 }
0x1001   : > { %5594 = vmatprep.subr.bf16.mxu0 %v5593_v46 }
0x1004   : > { %5596 = vmatpush3.bf16.msra.mxu0 %v5593_v46 }
0x1005   : > { %5426 = vmatprep.subr.mxu0 %v5764_v41 }
0x10ca   : > { %v5374_v50 = vpop.f32.mrb[16].mxu0 }
0x10cb   : > { %v2396_v52 = vadd.f32 %v5374_v50, %v5977_v57  ;;  %v2386_v53 = vpop.f32.mrb[17].mxu0 }
0x10cc   : > { %v2395_v54 = vadd.f32 %v2386_v53, %v5979_v58 }
0x10cd   : > { %v6094_v55 = vadd.f32 %v2400_v49, %v2396_v52 }
0x10ce   : > { %v6096_v56 = vadd.f32 %v2400_v49, %v2395_v54 }
0x10cf   : > { %v2419_v59 = vsel %vm500_vm0, %v6094_v55, 0.0 }
0x10d0   : > { %2420 = vadd.xlane.f32.xlu0 %v2419_v59  ;;  %v2416_v60 = vsel %vm500_vm0, %v6096_v56, 0.0 }
0x10d1   : > { %2417 = vadd.xlane.f32.xlu1 %v2416_v60 }
0x115d   : > { %v2421_v61 = vpop.xlane.xlu0 %2420 }
0x115e   : > { %v2423_v62 = vmul.f32 0.03125, %v2421_v61  ;;  %v2418_v63 = vpop.xlane.xlu1 %2417 }
0x115f   : > { %v2422_v57 = vmul.f32 0.03125, %v2418_v63 }
0x1160   : > { %v2425_v1 = vsub.f32 %v6094_v55, %v2423_v62 }
0x1161   : > { %v2424_v58 = vsub.f32 %v6096_v56, %v2422_v57 }
0x1162   : > { %v2427_v2 = vmul.f32 %v2425_v1, %v2425_v1 }
0x1163   : > { %v2426_v0 = vmul.f32 %v2424_v58, %v2424_v58 }
0x1164   : > { %v2431_v3 = vsel %vm500_vm0, %v2427_v2, 0.0 }
0x1165   : > { %2432 = vadd.xlane.f32.xlu1 %v2431_v3  ;;  %v2428_v4 = vsel %vm500_vm0, %v2426_v0, 0.0 }
0x1166   : > { %2429 = vadd.xlane.f32.xlu0 %v2428_v4 }
0x11f2   : > { %v2433_v11 = vpop.xlane.xlu1 %2432 }
0x11f3   : > { %v2435_v12 = vmul.f32 0.03125, %v2433_v11  ;;  %v2430_v13 = vpop.xlane.xlu0 %2429 }
0x11f4   : > { %v2434_v14 = vmul.f32 0.03125, %v2430_v13 }
0x11f5   : > { %v2437_v15 = vadd.f32 1e-05, %v2435_v12 }
0x11f6   : > { %v2436_v16 = vadd.f32 1e-05, %v2434_v14 }
0x11f7   : > { %5700 = vrsqrt.f32 %v2437_v15 }
0x11f8   : > { %5702 = vrsqrt.f32 %v2436_v16 }
0x1201   : > { %v5701_v22 = vpop.eup %5700 }
0x1202   : > { %v5703_v23 = vpop.eup %5702  ;;  %v2441_v24 = vmul.f32 %v5701_v22, %v2425_v1 }
0x1203   : > { %v2440_v25 = vmul.f32 %v5703_v23, %v2424_v58 }
0x1204   : > { %v2447_v31 = vmul.f32 %v2445_v21, %v2441_v24 }
0x1205   : > { %v2446_v32 = vmul.f32 %v2445_v21, %v2440_v25 }
0x1206   : > { %v2453_v34 = vadd.f32 %v2451_v27, %v2447_v31 }
0x1207   : > { %v2452_v33 = vadd.f32 %v2451_v27, %v2446_v32 }
0x1209   : > { %5383 = vmatprep.mubr.msk.f32.mxu1 %vm500_vm0, %v2452_v33 }
0x120a   : > { %5384 = vmatmul.mubr.msk.f32.vlgmr.msra.gmra.mrb[22].mxu1 %vm500_vm0, %v2453_v34 }
0x120b   : > { %5600 = vmatpush3.bf16.msra.mxu1 %v5597_v37 }
0x120c   : > { %5602 = vmatprep.subr.bf16.mxu1 %v5601_v40 }
0x120f   : > { %5604 = vmatpush3.bf16.msra.mxu1 %v5601_v40 }
0x1210   : > { %5416 = vmatprep.subr.mxu1 %v5764_v41 }
0x12dd   : > { %v5385_v49 = vpop.f32.mrb[22].mxu1 }
0x12de   : > { %v2538_v50 = vadd.f32 %v5385_v49, %v5023_v47  ;;  %v2532_v52 = vpop.f32.mrb[23].mxu1 }
0x12df   : > { %v2533_v53 = vadd.f32 %v5023_v47, %v2532_v52  ;;  %v6173_v47 = vld [vmem:[%s5871_s22 + $0x10] sm:$0xff] }
0x12e0   : > { %v2544_v54 = vmul.f32 0.044715, %v2538_v50  ;;  %v2542_v7 = vmul.f32 0.5, %v2538_v50  ;;  %v2689_v49 = vrot.slane %v6173_v47, %v530_v28 }
0x12e1   : > { %v2543_v59 = vmul.f32 0.044715, %v2533_v53  ;;  %v2541_v5 = vmul.f32 0.5, %v2533_v53 }
0x12e2   : > { %v2546_v60 = vmul.f32 %v2544_v54, %v2538_v50 }
0x12e3   : > { %v2545_v61 = vmul.f32 %v2543_v59, %v2533_v53 }
0x12e4   : > { %v2548_v62 = vmul.f32 %v2546_v60, %v2538_v50 }
0x12e5   : > { %v2547_v63 = vmul.f32 %v2545_v61, %v2533_v53 }
0x12e6   : > { %v2550_v57 = vadd.f32 %v2548_v62, %v2538_v50 }
0x12e7   : > { %v2549_v1 = vadd.f32 %v2547_v63, %v2533_v53  ;;  %v2695_v53 = vrot.slane %v6173_v47, %v536_v30 }
0x12e8   : > { %v2552_v58 = vmul.f32 0.7978846, %v2550_v57 }
0x12e9   : > { %v2551_v2 = vmul.f32 0.7978846, %v2549_v1 }
0x12ea   : > { %5704 = vtanh.f32 %v2552_v58 }
0x12eb   : > { %5706 = vtanh.f32 %v2551_v2 }
0x12f4   : > { %v5705_v0 = vpop.eup %5704 }
0x12f5   : > { %v5707_v3 = vpop.eup %5706  ;;  %v2556_v4 = vadd.f32 1.0, %v5705_v0 }
0x12f6   : > { %v2555_v6 = vadd.f32 1.0, %v5707_v3 }
0x12f7   : > { %v2558_v9 = vmul.f32 %v2556_v4, %v2542_v7 }
0x12f8   : > { %v2557_v8 = vmul.f32 %v2555_v6, %v2541_v5 }
0x12fa   : > { %5402 = vmatprep.mubr.msk.f32.mxu0 %vm2559_vm3, %v2557_v8 }
0x12fb   : > { %5403 = vmatmul.mubr.msk.f32.vlgmr.msra.gmra.mrb[18].mxu0 %vm2559_vm3, %v2558_v9 }
0x12fc   : > { %5428 = vmatprep.mubr.msk.f32.mxu0 %vm5765_vm1, %v5764_v41 }
0x13ce   : > { %v5404_v11 = vpop.f32.mrb[18].mxu0 }
0x13cf   : > { %v2642_v12 = vadd.f32 %v5404_v11, %v6094_v55  ;;  %v2632_v13 = vpop.f32.mrb[19].mxu0 }
0x13d0   : > { %v2641_v14 = vadd.f32 %v2632_v13, %v6096_v56 }
0x13d1   : > { %v6155_v15 = vadd.f32 %v5028_v10, %v2642_v12 }
0x13d2   : > { %v6157_v16 = vadd.f32 %v5028_v10, %v2641_v14 }
0x13d3   : > { %v2663_v21 = vsel %vm500_vm0, %v6155_v15, 0.0 }
0x13d4   : > { %2664 = vadd.xlane.f32.xlu1 %v2663_v21  ;;  %v2660_v22 = vsel %vm500_vm0, %v6157_v16, 0.0 }
0x13d5   : > { %2661 = vadd.xlane.f32.xlu0 %v2660_v22 }
0x1461   : > { %v2665_v23 = vpop.xlane.xlu1 %2664 }
0x1462   : > { %v2667_v55 = vmul.f32 0.03125, %v2665_v23  ;;  %v2662_v24 = vpop.xlane.xlu0 %2661 }
0x1463   : > { %v2666_v56 = vmul.f32 0.03125, %v2662_v24 }
0x1464   : > { %v2669_v25 = vsub.f32 %v6155_v15, %v2667_v55 }
0x1465   : > { %v2668_v27 = vsub.f32 %v6157_v16, %v2666_v56 }
0x1466   : > { %v2671_v31 = vmul.f32 %v2669_v25, %v2669_v25 }
0x1467   : > { %v2670_v32 = vmul.f32 %v2668_v27, %v2668_v27 }
0x1468   : > { %v2675_v33 = vsel %vm500_vm0, %v2671_v31, 0.0 }
0x1469   : > { %2676 = vadd.xlane.f32.xlu1 %v2675_v33  ;;  %v2672_v34 = vsel %vm500_vm0, %v2670_v32, 0.0 }
0x146a   : > { %2673 = vadd.xlane.f32.xlu0 %v2672_v34 }
0x14f6   : > { %v2677_v42 = vpop.xlane.xlu1 %2676 }
0x14f7   : > { %v2679_v36 = vmul.f32 0.03125, %v2677_v42  ;;  %v2674_v44 = vpop.xlane.xlu0 %2673 }
0x14f8   : > { %v2678_v45 = vmul.f32 0.03125, %v2674_v44 }
0x14f9   : > { %v2681_v43 = vadd.f32 1e-05, %v2679_v36 }
0x14fa   : > { %v2680_v46 = vadd.f32 1e-05, %v2678_v45 }
0x14fb   : > { %5708 = vrsqrt.f32 %v2681_v43 }
0x14fc   : > { %5710 = vrsqrt.f32 %v2680_v46 }
0x1505   : > { %v5709_v50 = vpop.eup %5708 }
0x1506   : > { %v5711_v52 = vpop.eup %5710  ;;  %v2685_v54 = vmul.f32 %v5709_v50, %v2669_v25 }
0x1507   : > { %v2684_v59 = vmul.f32 %v5711_v52, %v2668_v27 }
0x1508   : > { %v2691_v60 = vmul.f32 %v2689_v49, %v2685_v54 }
0x1509   : > { %v2690_v61 = vmul.f32 %v2689_v49, %v2684_v59 }
0x150a   : > { %v2697_v62 = vadd.f32 %v2695_v53, %v2691_v60 }
0x150b   : > { %v2696_v63 = vadd.f32 %v2695_v53, %v2690_v61 }
0x150d   : > { %5413 = vmatprep.mubr.msk.f32.mxu1 %vm500_vm0, %v2696_v63 }
0x150e   : > { %5414 = vmatmul.mubr.msk.f32.vlgmr.msra.gmra.mrb[24].mxu1 %vm500_vm0, %v2697_v62 }
0x150f   : > { %5418 = vmatprep.mubr.msk.f32.mxu1 %vm5765_vm1, %v5764_v41 }
0x15e1   : > { %v6185_v28 = vpop.f32.mrb[24].mxu1 }
0x15e2   : > { %2857 = vrot.lane.b32.xlu1 %v6185_v28, %s5766_s23  ;;  %v6189_v57 = vpop.f32.mrb[25].mxu1 }
0x15e3   : > { %2780 = vrot.lane.b32.xlu0 %v6189_v57, %s5766_s23 }
0x1654   : > { %v2858_v1 = vpop.permute.xlu1 %2857 }
0x1655   : > { %v2781_v30 = vpop.permute.xlu0 %2780 }
0x1656   : > { %5417 = vmatpush3.xpose.msk.msra.mxu1 %vm624_vm2, %v2781_v30 }
0x1657   : > { %5421 = vmatprep.subr.mxu1 %v5764_v41 }
0x1659   : > { %5419 = vmatmul.mubr.msk.f32.vlgmr.msra.gmra.mrb[26].mxu1 %vm624_vm2, %v6189_v57 }
0x165a   : > { %5422 = vmatpush3.xpose.msk.msra.mxu1 %vm624_vm2, %v2858_v1  ;;  %5423 = vmatprep.mubr.msk.f32.mxu1 %vm5765_vm1, %v5764_v41 }
0x165b   : > { %5431 = vmatprep.subr.mxu1 %v5764_v41 }
0x165d   : > { %5424 = vmatmul.mubr.msk.f32.vlgmr.msra.gmra.mrb[28].mxu1 %vm624_vm2, %v6185_v28 }
0x165e   : > { %5433 = vmatprep.mubr.msk.f32.mxu1 %vm5765_vm1, %v5764_v41 }
0x172c   : > { %v2852_v58 = vpop.f32.mrb[26].mxu1 }
0x172d   : > { %v5420_v2 = vpop.f32.mrb[27].mxu1  ;;  %v2933_v0 = vsel %vm624_vm2, %v2852_v58, -inf }
0x172e   : > { %2934 = vmax.xlane.f32.xlu1 %v2933_v0 }
0x1730   : > { %v2929_v3 = vpop.f32.mrb[28].mxu1 }
0x1731   : > { %v5425_v4 = vpop.f32.mrb[29].mxu1  ;;  %v2936_v5 = vsel %vm624_vm2, %v2929_v3, -inf }
0x1732   : > { %2937 = vmax.xlane.f32.xlu0 %v2936_v5  ;;  %v5036_v4 = vld [vmem:[%s5960_s12 + $0x18] sm:$0xff]  ;;  %v5035_v5 = vld [vmem:[%s5960_s12 + $0x10] sm:$0xff] }
0x173f   : > { %3031 = vrot.lane.b32.xlu1 %v6185_v28, %s5767_s24 }
0x1743   : > { %3109 = vrot.lane.b32.xlu1 %v6189_v57, %s5768_s25 }
0x1747   : > { %3187 = vrot.lane.b32.xlu1 %v6185_v28, %s5768_s25 }
0x1748   : > { %2955 = vrot.lane.b32.xlu0 %v6189_v57, %s5767_s24 }
0x17bb   : > { %v2935_v6 = vpop.xlane.xlu1 %2934 }
0x17bc   : > { %v2939_v7 = vsub.f32 %v2852_v58, %v2935_v6 }
0x17be   : > { %v2941_v8 = vmul.f32 1.442695, %v2939_v7 }
0x17bf   : > { %v3032_v9 = vpop.permute.xlu1 %3031  ;;  %v2938_v10 = vpop.xlane.xlu0 %2937 }
0x17c0   : > { %5712 = vpow2.f32 %v2941_v8  ;;  %v2940_v11 = vsub.f32 %v2929_v3, %v2938_v10  ;;  %5432 = vmatpush3.msra.mxu1 %v3032_v9  ;;  %v3604_v9 = vrot.slane %v6173_v47, %v1446_v51 }
0x17c1   : > { %5441 = vmatprep.subr.mxu1 %v5764_v41 }
0x17c2   : > { %v2943_v12 = vmul.f32 1.442695, %v2940_v11 }
0x17c3   : > { %v2956_v13 = vpop.permute.xlu0 %2955  ;;  %v3110_v55 = vpop.permute.xlu1 %3109 }
0x17c4   : > { %5714 = vpow2.f32 %v2943_v12  ;;  %5427 = vmatpush3.msra.mxu0 %v2956_v13 }
0x17c5   : > { %5436 = vmatprep.subr.mxu0 %v5764_v41 }
0x17c7   : > { %v3188_v24 = vpop.permute.xlu1 %3187 }
0x17ca   : > { %v5713_v14 = vpop.eup %5712 }
0x17cb   : > { %v2945_v21 = vsel %vm624_vm2, %v5713_v14, 0.0 }
0x17cc   : > { %2946 = vadd.xlane.f32.xlu0 %v2945_v21 }
0x17ce   : > { %v5715_v22 = vpop.eup %5714 }
0x17cf   : > { %v2948_v23 = vsel %vm624_vm2, %v5715_v22, 0.0 }
0x17d0   : > { %2949 = vadd.xlane.f32.xlu1 %v2948_v23 }
0x17e1   : > { %3185 = vrot.lane.b32.xlu1 %v6185_v28, %s5769_s26 }
0x17e2   : > { %3107 = vrot.lane.b32.xlu0 %v6189_v57, %s5769_s26 }
0x1859   : > { %v2947_v56 = vpop.xlane.xlu0 %2946 }
0x185a   : > { %5716 = vrcp.f32 %v2947_v56 }
0x185d   : > { %v2950_v25 = vpop.xlane.xlu1 %2949  ;;  %v3108_v34 = vpop.permute.xlu0 %3107 }
0x185e   : > { %5718 = vrcp.f32 %v2950_v25 }
0x1861   : > { %v3186_v29 = vpop.permute.xlu1 %3185 }
0x1864   : > { %v5717_v27 = vpop.eup %5716 }
0x1865   : > { %v2953_v31 = vmul.f32 %v5717_v27, %v5713_v14 }
0x1867   : > { %5429 = vmatmul.mubr.msk.f32.vlgmr.msra.gmra.mrb[20].mxu0 %vm624_vm2, %v2953_v31 }
0x1868   : > { %v5719_v32 = vpop.eup %5718  ;;  %5437 = vmatpush3.xpose.msk.msra.mxu0 %vm624_vm2, %v3110_v55  ;;  %5438 = vmatprep.mubr.msk.f32.mxu0 %vm5765_vm1, %v5764_v41 }
0x1869   : > { %v2954_v33 = vmul.f32 %v5719_v32, %v5715_v22  ;;  %5446 = vmatprep.subr.mxu0 %v5764_v41 }
0x186b   : > { %5434 = vmatmul.mubr.msk.f32.vlgmr.msra.gmra.mrb[30].mxu1 %vm624_vm2, %v2954_v33  ;;  %5439 = vmatmul.mubr.msk.f32.vlgmr.msra.gmra.mrb[22].mxu0 %vm624_vm2, %v3108_v34  ;;  %v5055_v33 = vld [vmem:[%s5993_s16 + $0x20] sm:$0xff]  ;;  %v5056_v34 = vld [vmem:[%s5993_s16 + $0x28] sm:$0xff] }
0x186c   : > { %5442 = vmatpush3.xpose.msk.msra.mxu1 %vm624_vm2, %v3188_v24  ;;  %5443 = vmatprep.mubr.msk.f32.mxu1 %vm5765_vm1, %v5764_v41 }
0x186d   : > { %5451 = vmatprep.subr.mxu1 %v5764_v41  ;;  %5448 = vmatprep.mubr.msk.f32.mxu0 %vm5765_vm1, %v5764_v41 }
0x186f   : > { %5444 = vmatmul.mubr.msk.f32.vlgmr.msra.gmra.mrb[32].mxu1 %vm624_vm2, %v3186_v29  ;;  %v5605_v29 = vpack.c.bf16 %v5056_v34, %v5055_v33 }
0x1870   : > { %5453 = vmatprep.mubr.msk.f32.mxu1 %vm5765_vm1, %v5764_v41 }
0x193a   : > { %v3027_v35 = vpop.f32.mrb[20].mxu0 }
0x193b   : > { %v5430_v37 = vpop.f32.mrb[21].mxu0 }
0x193c   : > { %v5058_v37 = vld [vmem:[%s5993_s16 + $0x38] sm:$0xff] }
0x193e   : > { %v3103_v38 = vpop.f32.mrb[30].mxu1  ;;  %v3181_v39 = vpop.f32.mrb[22].mxu0 }
0x193f   : > { %v5435_v40 = vpop.f32.mrb[31].mxu1  ;;  %v5440_v42 = vpop.f32.mrb[23].mxu0  ;;  %v3263_v36 = vsel %vm624_vm2, %v3181_v39, -inf }
0x1940   : > { %3264 = vmax.xlane.f32.xlu0 %v3263_v36 }
0x1942   : > { %v3259_v44 = vpop.f32.mrb[32].mxu1 }
0x1943   : > { %v5445_v45 = vpop.f32.mrb[33].mxu1  ;;  %v3266_v43 = vsel %vm624_vm2, %v3259_v44, -inf }
0x1944   : > { %3267 = vmax.xlane.f32.xlu1 %v3266_v43  ;;  %v3644_v43 = vrot.slane %v6173_v47, %v1484_v19 }
0x1955   : > { %3361 = vrot.lane.b32.xlu1 %v6185_v28, %s5770_s27 }
0x19cd   : > { %v3265_v46 = vpop.xlane.xlu0 %3264 }
0x19ce   : > { %v3269_v49 = vsub.f32 %v3181_v39, %v3265_v46 }
0x19d0   : > { %v3271_v50 = vmul.f32 1.442695, %v3269_v49 }
0x19d1   : > { %v3268_v52 = vpop.xlane.xlu1 %3267 }
0x19d2   : > { %5720 = vpow2.f32 %v3271_v50  ;;  %v3270_v53 = vsub.f32 %v3259_v44, %v3268_v52 }
0x19d4   : > { %v3273_v54 = vmul.f32 1.442695, %v3270_v53  ;;  %v3650_v53 = vrot.slane %v6173_v47, %v1490_v20 }
0x19d5   : > { %v3362_v59 = vpop.permute.xlu1 %3361 }
0x19d6   : > { %5722 = vpow2.f32 %v3273_v54  ;;  %5452 = vmatpush3.msra.mxu1 %v3362_v59 }
0x19d7   : > { %5606 = vmatprep.subr.bf16.mxu1 %v5605_v29 }
0x19dc   : > { %v5721_v60 = vpop.eup %5720 }
0x19dd   : > { %v3275_v61 = vsel %vm624_vm2, %v5721_v60, 0.0 }
0x19de   : > { %3276 = vadd.xlane.f32.xlu0 %v3275_v61 }
0x19e0   : > { %v5723_v62 = vpop.eup %5722 }
0x19e1   : > { %v3278_v63 = vsel %vm624_vm2, %v5723_v62, 0.0 }
0x19e2   : > { %3279 = vadd.xlane.f32.xlu0 %v3278_v63 }
0x19f8   : > { %3285 = vrot.lane.b32.xlu0 %v6189_v57, %s5770_s27 }
0x1a6b   : > { %v3277_v28 = vpop.xlane.xlu0 %3276 }
0x1a6c   : > { %5724 = vrcp.f32 %v3277_v28 }
0x1a6f   : > { %v3280_v30 = vpop.xlane.xlu0 %3279 }
0x1a70   : > { %5726 = vrcp.f32 %v3280_v30 }
0x1a73   : > { %v3286_v1 = vpop.permute.xlu0 %3285 }
0x1a74   : > { %5447 = vmatpush3.msra.mxu0 %v3286_v1 }
0x1a75   : > { %5456 = vmatprep.subr.mxu0 %v5036_v4 }
0x1a76   : > { %v5725_v58 = vpop.eup %5724 }
0x1a77   : > { %v3283_v2 = vmul.f32 %v5725_v58, %v5721_v60 }
0x1a79   : > { %5449 = vmatmul.mubr.msk.f32.vlgmr.msra.gmra.mrb[24].mxu0 %vm624_vm2, %v3283_v2 }
0x1a7a   : > { %v5727_v0 = vpop.eup %5726  ;;  %5457 = vmatpush3.msra.mxu0 %v5036_v4 }
0x1a7b   : > { %v3284_v3 = vmul.f32 %v5727_v0, %v5723_v62  ;;  %5461 = vmatprep.subr.mxu0 %v5035_v5 }
0x1a7d   : > { %5454 = vmatmul.mubr.msk.f32.vlgmr.msra.gmra.mrb[34].mxu1 %vm624_vm2, %v3284_v3 }
0x1a7e   : > { %5608 = vmatpush3.bf16.msra.mxu1 %v5605_v29 }
0x1b4c   : > { %v3357_v57 = vpop.f32.mrb[24].mxu0 }
0x1b4d   : > { %v5450_v6 = vpop.f32.mrb[25].mxu0  ;;  %5458 = vmatprep.mubr.msk.f32.mxu0 %vm624_vm2, %v3357_v57 }
0x1b50   : > { %v3433_v7 = vpop.f32.mrb[34].mxu1 }
0x1b51   : > { %v5455_v8 = vpop.f32.mrb[35].mxu1  ;;  %5459 = vmatmul.mubr.msk.f32.vlgmr.msra.gmra.mrb[26].mxu0 %vm624_vm2, %v3433_v7 }
0x1b52   : > { %5462 = vmatpush3.msra.mxu0 %v5035_v5  ;;  %5463 = vmatprep.mubr.msk.f32.mxu0 %vm624_vm2, %v3027_v35  ;;  %v5057_v35 = vld [vmem:[%s5993_s16 + $0x30] sm:$0xff] }
0x1b53   : > { %5477 = vmatprep.subr.mxu0 %v5764_v41 }
0x1b59   : > { %5464 = vmatmul.mubr.msk.f32.vlgmr.msra.gmra.mrb[26].mxu0 %vm624_vm2, %v3103_v38  ;;  %v5609_v38 = vpack.c.bf16 %v5058_v37, %v5057_v35 }
0x1b5a   : > { %5479 = vmatprep.mubr.msk.f32.mxu0 %vm5765_vm1, %v5764_v41 }
0x1b5b   : > { %5610 = vmatprep.subr.bf16.mxu1 %v5609_v38 }
0x1b5c   : > { %5612 = vmatpush3.bf16.msra.mxu1 %v5609_v38 }
0x1b5d   : > { %5482 = vmatprep.subr.mxu1 %v5764_v41 }
0x1c2c   : > { %v5465_v10 = vpop.f32.mrb[26].mxu0 }
0x1c2d   : > { %v3600_v11 = vadd.f32 %v5465_v10, %v6155_v15  ;;  %v3590_v12 = vpop.f32.mrb[27].mxu0 }
0x1c2e   : > { %v3599_v13 = vadd.f32 %v3590_v12, %v6157_v16 }
0x1c2f   : > { %v6263_v14 = vadd.f32 %v3604_v9, %v3600_v11 }
0x1c30   : > { %v6265_v21 = vadd.f32 %v3604_v9, %v3599_v13 }
0x1c31   : > { %v3618_v22 = vsel %vm500_vm0, %v6263_v14, 0.0 }
0x1c32   : > { %3619 = vadd.xlane.f32.xlu0 %v3618_v22  ;;  %v3615_v23 = vsel %vm500_vm0, %v6265_v21, 0.0 }
0x1c33   : > { %3616 = vadd.xlane.f32.xlu1 %v3615_v23 }
0x1cbf   : > { %v3620_v51 = vpop.xlane.xlu0 %3619 }
0x1cc0   : > { %v3622_v15 = vmul.f32 0.03125, %v3620_v51  ;;  %v3617_v55 = vpop.xlane.xlu1 %3616 }
0x1cc1   : > { %v3621_v16 = vmul.f32 0.03125, %v3617_v55 }
0x1cc2   : > { %v3624_v24 = vsub.f32 %v6263_v14, %v3622_v15 }
0x1cc3   : > { %v3623_v56 = vsub.f32 %v6265_v21, %v3621_v16 }
0x1cc4   : > { %v3626_v25 = vmul.f32 %v3624_v24, %v3624_v24 }
0x1cc5   : > { %v3625_v27 = vmul.f32 %v3623_v56, %v3623_v56 }
0x1cc6   : > { %v3630_v31 = vsel %vm500_vm0, %v3626_v25, 0.0 }
0x1cc7   : > { %3631 = vadd.xlane.f32.xlu1 %v3630_v31  ;;  %v3627_v32 = vsel %vm500_vm0, %v3625_v27, 0.0 }
0x1cc8   : > { %3628 = vadd.xlane.f32.xlu0 %v3627_v32 }
0x1d54   : > { %v3632_v39 = vpop.xlane.xlu1 %3631 }
0x1d55   : > { %v3634_v40 = vmul.f32 0.03125, %v3632_v39  ;;  %v3629_v42 = vpop.xlane.xlu0 %3628 }
0x1d56   : > { %v3633_v36 = vmul.f32 0.03125, %v3629_v42 }
0x1d57   : > { %v3636_v44 = vadd.f32 1e-05, %v3634_v40 }
0x1d58   : > { %v3635_v45 = vadd.f32 1e-05, %v3633_v36 }
0x1d59   : > { %5728 = vrsqrt.f32 %v3636_v44 }
0x1d5a   : > { %5730 = vrsqrt.f32 %v3635_v45 }
0x1d63   : > { %v5729_v46 = vpop.eup %5728 }
0x1d64   : > { %v5731_v49 = vpop.eup %5730  ;;  %v3640_v50 = vmul.f32 %v5729_v46, %v3624_v24 }
0x1d65   : > { %v3639_v52 = vmul.f32 %v5731_v49, %v3623_v56 }
0x1d66   : > { %v3646_v54 = vmul.f32 %v3644_v43, %v3640_v50 }
0x1d67   : > { %v3645_v59 = vmul.f32 %v3644_v43, %v3639_v52 }
0x1d68   : > { %v3652_v61 = vadd.f32 %v3650_v53, %v3646_v54 }
0x1d69   : > { %v3651_v60 = vadd.f32 %v3650_v53, %v3645_v59 }
0x1d6b   : > { %5474 = vmatprep.mubr.msk.f32.mxu1 %vm500_vm0, %v3651_v60 }
0x1d6c   : > { %5475 = vmatmul.mubr.msk.f32.vlgmr.msra.gmra.mrb[36].mxu1 %vm500_vm0, %v3652_v61 }
0x1d6d   : > { %5484 = vmatprep.mubr.msk.f32.mxu1 %vm5765_vm1, %v5764_v41 }
0x1e3f   : > { %v6290_v19 = vpop.f32.mrb[36].mxu1 }
0x1e40   : > { %3812 = vrot.lane.b32.xlu1 %v6290_v19, %s5766_s23  ;;  %v6294_v62 = vpop.f32.mrb[37].mxu1 }
0x1e41   : > { %3735 = vrot.lane.b32.xlu0 %v6294_v62, %s5766_s23 }
0x1eb2   : > { %v3813_v20 = vpop.permute.xlu1 %3812 }
0x1eb3   : > { %5483 = vmatpush3.xpose.msk.msra.mxu1 %vm624_vm2, %v3813_v20  ;;  %v3736_v63 = vpop.permute.xlu0 %3735 }
0x1eb4   : > { %5478 = vmatpush3.xpose.msk.msra.mxu0 %vm624_vm2, %v3736_v63  ;;  %5492 = vmatprep.subr.mxu1 %v5764_v41 }
0x1eb5   : > { %5487 = vmatprep.subr.mxu0 %v5764_v41 }
0x1eb6   : > { %5485 = vmatmul.mubr.msk.f32.vlgmr.msra.gmra.mrb[38].mxu1 %vm624_vm2, %v6290_v19 }
0x1eb7   : > { %5480 = vmatmul.mubr.msk.f32.vlgmr.msra.gmra.mrb[28].mxu0 %vm624_vm2, %v6294_v62  ;;  %5494 = vmatprep.mubr.msk.f32.mxu1 %vm5765_vm1, %v5764_v41 }
0x1eb8   : > { %5489 = vmatprep.mubr.msk.f32.mxu0 %vm5765_vm1, %v5764_v41 }
0x1f89   : > { %v3884_v28 = vpop.f32.mrb[38].mxu1 }
0x1f8a   : > { %v3807_v30 = vpop.f32.mrb[28].mxu0  ;;  %v5486_v1 = vpop.f32.mrb[39].mxu1  ;;  %v3891_v58 = vsel %vm624_vm2, %v3884_v28, -inf }
0x1f8b   : > { %v5481_v2 = vpop.f32.mrb[29].mxu0  ;;  %3892 = vmax.xlane.f32.xlu0 %v3891_v58  ;;  %v3888_v0 = vsel %vm624_vm2, %v3807_v30, -inf }
0x1f8c   : > { %3889 = vmax.xlane.f32.xlu1 %v3888_v0  ;;  %v4559_v0 = vrot.slane %v6173_v47, %v2399_v48 }
0x1f9d   : > { %3986 = vrot.lane.b32.xlu1 %v6290_v19, %s5767_s24 }
0x1fa1   : > { %4064 = vrot.lane.b32.xlu1 %v6294_v62, %s5768_s25  ;;  %3910 = vrot.lane.b32.xlu0 %v6294_v62, %s5767_s24  ;;  %s489_s24 = scalar_lea.vmem %s6422_s9, %s5100_s11 }
0x1fa5   : > { %4142 = vrot.lane.b32.xlu1 %v6290_v19, %s5768_s25 }
0x2018   : > { %v3893_v3 = vpop.xlane.xlu0 %3892 }
0x2019   : > { %v3895_v4 = vsub.f32 %v3884_v28, %v3893_v3  ;;  %v3890_v5 = vpop.xlane.xlu1 %3889  ;;  %v5060_v28 = vld [vmem:[%s6080_s21 + $0x18] sm:$0xff] }
0x201a   : > { %v3894_v57 = vsub.f32 %v3807_v30, %v3890_v5  ;;  %v5059_v30 = vld [vmem:[%s6080_s21 + $0x10] sm:$0xff] }
0x201b   : > { %v3898_v6 = vmul.f32 1.442695, %v3895_v4 }
0x201c   : > { %v3896_v7 = vmul.f32 1.442695, %v3894_v57  ;;  %v3911_v8 = vpop.permute.xlu0 %3910 }
0x201d   : > { %5732 = vpow2.f32 %v3898_v6  ;;  %v3987_v9 = vpop.permute.xlu1 %3986  ;;  %5488 = vmatpush3.msra.mxu0 %v3911_v8 }
0x201e   : > { %5734 = vpow2.f32 %v3896_v7  ;;  %5493 = vmatpush3.msra.mxu1 %v3987_v9  ;;  %5497 = vmatprep.subr.mxu0 %v5764_v41 }
0x201f   : > { %5502 = vmatprep.subr.mxu1 %v5764_v41 }
0x2021   : > { %v4065_v22 = vpop.permute.xlu1 %4064 }
0x2025   : > { %v4143_v23 = vpop.permute.xlu1 %4142 }
0x2027   : > { %v5733_v10 = vpop.eup %5732 }
0x2028   : > { %v5735_v11 = vpop.eup %5734  ;;  %v3903_v12 = vsel %vm624_vm2, %v5733_v10, 0.0 }
0x2029   : > { %3904 = vadd.xlane.f32.xlu1 %v3903_v12  ;;  %v3900_v13 = vsel %vm624_vm2, %v5735_v11, 0.0 }
0x202a   : > { %3901 = vadd.xlane.f32.xlu0 %v3900_v13 }
0x203a   : > { %4140 = vrot.lane.b32.xlu1 %v6290_v19, %s5769_s26 }
0x2040   : > { %4062 = vrot.lane.b32.xlu0 %v6294_v62, %s5769_s26 }
0x20b6   : > { %v3905_v51 = vpop.xlane.xlu1 %3904 }
0x20b7   : > { %5736 = vrcp.f32 %v3905_v51  ;;  %v3902_v15 = vpop.xlane.xlu0 %3901 }
0x20b8   : > { %5738 = vrcp.f32 %v3902_v15  ;;  %v5079_v15 = vld [vmem:[%s6110_s29 + $0x20] sm:$0xff] }
0x20ba   : > { %v4141_v25 = vpop.permute.xlu1 %4140 }
0x20bb   : > { %v4063_v27 = vpop.permute.xlu0 %4062 }
0x20c1   : > { %v5737_v55 = vpop.eup %5736 }
0x20c2   : > { %v5739_v16 = vpop.eup %5738  ;;  %v3909_v24 = vmul.f32 %v5737_v55, %v5733_v10  ;;  %v5080_v55 = vld [vmem:[%s6110_s29 + $0x28] sm:$0xff] }
0x20c3   : > { %v3908_v56 = vmul.f32 %v5739_v16, %v5735_v11  ;;  %v5613_v16 = vpack.c.bf16 %v5080_v55, %v5079_v15 }
0x20c4   : > { %5495 = vmatmul.mubr.msk.f32.vlgmr.msra.gmra.mrb[40].mxu1 %vm624_vm2, %v3909_v24  ;;  %v5081_v24 = vld [vmem:[%s6110_s29 + $0x30] sm:$0xff] }
0x20c5   : > { %5503 = vmatpush3.xpose.msk.msra.mxu1 %vm624_vm2, %v4143_v23  ;;  %5490 = vmatmul.mubr.msk.f32.vlgmr.msra.gmra.mrb[30].mxu0 %vm624_vm2, %v3908_v56  ;;  %v5082_v56 = vld [vmem:[%s6110_s29 + $0x38] sm:$0xff] }
0x20c6   : > { %5498 = vmatpush3.xpose.msk.msra.mxu0 %vm624_vm2, %v4065_v22  ;;  %5504 = vmatprep.mubr.msk.f32.mxu1 %vm5765_vm1, %v5764_v41 }
0x20c7   : > { %5499 = vmatprep.mubr.msk.f32.mxu0 %vm5765_vm1, %v5764_v41  ;;  %5512 = vmatprep.subr.mxu1 %v5764_v41 }
0x20c8   : > { %5505 = vmatmul.mubr.msk.f32.vlgmr.msra.gmra.mrb[42].mxu1 %vm624_vm2, %v4141_v25  ;;  %5507 = vmatprep.subr.mxu0 %v5764_v41  ;;  %v5617_v25 = vpack.c.bf16 %v5082_v56, %v5081_v24 }
0x20c9   : > { %5500 = vmatmul.mubr.msk.f32.vlgmr.msra.gmra.mrb[32].mxu0 %vm624_vm2, %v4063_v27  ;;  %5514 = vmatprep.mubr.msk.f32.mxu1 %vm5765_vm1, %v5764_v41 }
0x20ca   : > { %5509 = vmatprep.mubr.msk.f32.mxu0 %vm5765_vm1, %v5764_v41 }
0x2197   : > { %v4058_v31 = vpop.f32.mrb[40].mxu1 }
0x2198   : > { %v3982_v32 = vpop.f32.mrb[30].mxu0  ;;  %v5496_v33 = vpop.f32.mrb[41].mxu1 }
0x2199   : > { %v5491_v34 = vpop.f32.mrb[31].mxu0 }
0x219b   : > { %v4214_v29 = vpop.f32.mrb[42].mxu1 }
0x219c   : > { %v4136_v35 = vpop.f32.mrb[32].mxu0  ;;  %v5506_v37 = vpop.f32.mrb[43].mxu1  ;;  %v4221_v38 = vsel %vm624_vm2, %v4214_v29, -inf }
0x219d   : > { %v5501_v39 = vpop.f32.mrb[33].mxu0  ;;  %4222 = vmax.xlane.f32.xlu1 %v4221_v38  ;;  %v4218_v40 = vsel %vm624_vm2, %v4136_v35, -inf }
0x219e   : > { %4219 = vmax.xlane.f32.xlu0 %v4218_v40 }
0x21ae   : > { %4316 = vrot.lane.b32.xlu1 %v6290_v19, %s5770_s27 }
0x222a   : > { %v4223_v42 = vpop.xlane.xlu1 %4222 }
0x222b   : > { %v4225_v36 = vsub.f32 %v4214_v29, %v4223_v42  ;;  %v4220_v41 = vpop.xlane.xlu0 %4219  ;;  %v4613_v42 = vrot.slane %v6173_v47, %v2450_v18 }
0x222c   : > { %v4224_v44 = vsub.f32 %v4136_v35, %v4220_v41  ;;  %v4607_v35 = vrot.slane %v6173_v47, %v2444_v17  ;;  %v5084_v17 = vld [vmem:[%s6130_s17 + $0x40] sm:$0xff]  ;;  %v5090_v47 = vld [vmem:[%s6130_s17 + $0x70] sm:$0xff] }
0x222d   : > { %v4228_v45 = vmul.f32 1.442695, %v4225_v36 }
0x222e   : > { %v4226_v43 = vmul.f32 1.442695, %v4224_v44  ;;  %v4317_v46 = vpop.permute.xlu1 %4316 }
0x222f   : > { %5740 = vpow2.f32 %v4228_v45  ;;  %5513 = vmatpush3.msra.mxu1 %v4317_v46 }
0x2230   : > { %5742 = vpow2.f32 %v4226_v43  ;;  %5614 = vmatprep.subr.bf16.mxu1 %v5613_v16  ;;  %v5085_v43 = vld [vmem:[%s6130_s17 + $0x48] sm:$0xff] }
0x2231   : > { %v5621_v46 = vpack.c.bf16 %v5085_v43, %v5084_v17 }
0x2239   : > { %v5741_v49 = vpop.eup %5740 }
0x223a   : > { %v4233_v50 = vsel %vm624_vm2, %v5741_v49, 0.0  ;;  %v5743_v52 = vpop.eup %5742 }
0x223b   : > { %4234 = vadd.xlane.f32.xlu0 %v4233_v50  ;;  %v4230_v53 = vsel %vm624_vm2, %v5743_v52, 0.0  ;;  %v5087_v50 = vld [vmem:[%s6130_s17 + $0x58] sm:$0xff] }
0x223f   : > { %4231 = vadd.xlane.f32.xlu0 %v4230_v53  ;;  %v5089_v53 = vld [vmem:[%s6130_s17 + $0x68] sm:$0xff] }
0x2240   : > { %v5629_v18 = vpack.c.bf16 %v5089_v53, %v5088_v26 }
0x2255   : > { %4240 = vrot.lane.b32.xlu0 %v6294_v62, %s5770_s27 }
0x22c8   : > { %v4235_v54 = vpop.xlane.xlu0 %4234 }
0x22c9   : > { %5744 = vrcp.f32 %v4235_v54  ;;  %v5091_v54 = vld [vmem:[%s6130_s17 + $0x78] sm:$0xff] }
0x22cc   : > { %v4232_v59 = vpop.xlane.xlu0 %4231 }
0x22cd   : > { %5746 = vrcp.f32 %v4232_v59  ;;  %v5633_v59 = vpack.c.bf16 %v5091_v54, %v5090_v47 }
0x22d0   : > { %v4241_v60 = vpop.permute.xlu0 %4240 }
0x22d1   : > { %5508 = vmatpush3.msra.mxu0 %v4241_v60  ;;  %v5092_v60 = vld [vmem:[%s6145_s15 + $0x1] ss:$0 sm:$0xff] }
0x22d2   : > { %5517 = vmatprep.subr.mxu0 %v5060_v28 }
0x22d3   : > { %v5745_v61 = vpop.eup %5744 }
0x22d4   : > { %v4239_v19 = vmul.f32 %v5745_v61, %v5741_v49  ;;  %v5086_v49 = vld [vmem:[%s6130_s17 + $0x50] sm:$0xff] }
0x22d6   : > { %5515 = vmatmul.mubr.msk.f32.vlgmr.msra.gmra.mrb[44].mxu1 %vm624_vm2, %v4239_v19 }
0x22d7   : > { %v5747_v20 = vpop.eup %5746  ;;  %5616 = vmatpush3.bf16.msra.mxu1 %v5613_v16 }
0x22d8   : > { %v4238_v63 = vmul.f32 %v5747_v20, %v5743_v52  ;;  %5618 = vmatprep.subr.bf16.mxu1 %v5617_v25  ;;  %v5625_v52 = vpack.c.bf16 %v5087_v50, %v5086_v49 }
0x22da   : > { %5510 = vmatmul.mubr.msk.f32.vlgmr.msra.gmra.mrb[34].mxu0 %vm624_vm2, %v4238_v63 }
0x22db   : > { %5518 = vmatpush3.msra.mxu0 %v5060_v28  ;;  %5620 = vmatpush3.bf16.msra.mxu1 %v5617_v25 }
0x22dc   : > { %5522 = vmatprep.subr.mxu0 %v5059_v30 }
0x23a9   : > { %v4388_v62 = vpop.f32.mrb[44].mxu1 }
0x23aa   : > { %v5516_v1 = vpop.f32.mrb[45].mxu1 }
0x23ad   : > { %v4312_v58 = vpop.f32.mrb[34].mxu0 }
0x23ae   : > { %v5511_v2 = vpop.f32.mrb[35].mxu0  ;;  %5519 = vmatprep.mubr.msk.f32.mxu0 %vm624_vm2, %v4312_v58 }
0x23af   : > { %5520 = vmatmul.mubr.msk.f32.vlgmr.msra.gmra.mrb[36].mxu0 %vm624_vm2, %v4388_v62 }
0x23b0   : > { %5523 = vmatpush3.msra.mxu0 %v5059_v30  ;;  %5524 = vmatprep.mubr.msk.f32.mxu0 %vm624_vm2, %v3982_v32 }
0x23b1   : > { %5622 = vmatprep.subr.bf16.mxu0 %v5621_v46 }
0x23b7   : > { %5525 = vmatmul.mubr.msk.f32.vlgmr.msra.gmra.mrb[36].mxu0 %vm624_vm2, %v4058_v31 }
0x23b8   : > { %5624 = vmatpush3.bf16.msra.mxu0 %v5621_v46 }
0x23b9   : > { %5626 = vmatprep.subr.bf16.mxu0 %v5625_v52 }
0x23bc   : > { %5628 = vmatpush3.bf16.msra.mxu0 %v5625_v52 }
0x23bd   : > { %5630 = vmatprep.subr.bf16.mxu0 %v5629_v18 }
0x23c0   : > { %5632 = vmatpush3.bf16.msra.mxu0 %v5629_v18 }
0x23c1   : > { %5634 = vmatprep.subr.bf16.mxu0 %v5633_v59 }
0x23c4   : > { %5636 = vmatpush3.bf16.msra.mxu0 %v5633_v59 }
0x248a   : > { %v5526_v3 = vpop.f32.mrb[36].mxu0 }
0x248b   : > { %v4555_v4 = vadd.f32 %v5526_v3, %v6263_v14  ;;  %v4545_v5 = vpop.f32.mrb[37].mxu0 }
0x248c   : > { %v4554_v57 = vadd.f32 %v4545_v5, %v6265_v21 }
0x248d   : > { %v6365_v6 = vadd.f32 %v4559_v0, %v4555_v4 }
0x248e   : > { %v6367_v7 = vadd.f32 %v4559_v0, %v4554_v57 }
0x248f   : > { %v4581_v8 = vsel %vm500_vm0, %v6365_v6, 0.0 }
0x2490   : > { %4582 = vadd.xlane.f32.xlu0 %v4581_v8  ;;  %v4578_v9 = vsel %vm500_vm0, %v6367_v7, 0.0 }
0x2491   : > { %4579 = vadd.xlane.f32.xlu1 %v4578_v9 }
0x251d   : > { %v4583_v48 = vpop.xlane.xlu0 %4582 }
0x251e   : > { %v4585_v14 = vmul.f32 0.03125, %v4583_v48  ;;  %v4580_v10 = vpop.xlane.xlu1 %4579 }
0x251f   : > { %v4584_v21 = vmul.f32 0.03125, %v4580_v10 }
0x2520   : > { %v4587_v11 = vsub.f32 %v6365_v6, %v4585_v14 }
0x2521   : > { %v4586_v12 = vsub.f32 %v6367_v7, %v4584_v21 }
0x2522   : > { %v4589_v13 = vmul.f32 %v4587_v11, %v4587_v11 }
0x2523   : > { %v4588_v22 = vmul.f32 %v4586_v12, %v4586_v12 }
0x2524   : > { %v4593_v23 = vsel %vm500_vm0, %v4589_v13, 0.0 }
0x2525   : > { %4594 = vadd.xlane.f32.xlu1 %v4593_v23  ;;  %v4590_v51 = vsel %vm500_vm0, %v4588_v22, 0.0 }
0x2526   : > { %4591 = vadd.xlane.f32.xlu0 %v4590_v51 }
0x25b2   : > { %v4595_v27 = vpop.xlane.xlu1 %4594 }
0x25b3   : > { %v4597_v31 = vmul.f32 0.03125, %v4595_v27  ;;  %v4592_v32 = vpop.xlane.xlu0 %4591 }
0x25b4   : > { %v4596_v33 = vmul.f32 0.03125, %v4592_v32 }
0x25b5   : > { %v4599_v34 = vadd.f32 1e-05, %v4597_v31 }
0x25b6   : > { %v4598_v29 = vadd.f32 1e-05, %v4596_v33 }
0x25b7   : > { %5748 = vrsqrt.f32 %v4599_v34 }
0x25b8   : > { %5750 = vrsqrt.f32 %v4598_v29 }
0x25c1   : > { %v5749_v37 = vpop.eup %5748 }
0x25c2   : > { %v5751_v38 = vpop.eup %5750  ;;  %v4603_v39 = vmul.f32 %v5749_v37, %v4587_v11 }
0x25c3   : > { %v4602_v40 = vmul.f32 %v5751_v38, %v4586_v12  ;;  %v5097_v12 = vld [vmem:[%s5871_s22 + $0x18] ss:$0 sm:$0xff] }
0x25c4   : > { %v4609_v36 = vmul.f32 %v4607_v35, %v4603_v39 }
0x25c5   : > { %v4608_v41 = vmul.f32 %v4607_v35, %v4602_v40 }
0x25c6   : > { %v4615_v45 = vadd.f32 %v4613_v42, %v4609_v36 }
0x25c7   : > { %v4614_v44 = vadd.f32 %v4613_v42, %v4608_v41 }
0x25c9   : > { %5535 = vmatprep.mubr.msk.f32.mxu1 %vm500_vm0, %v4614_v44 }
0x25ca   : > { %5536 = vmatmul.mubr.msk.f32.vlgmr.msra.gmra.mrb[46].mxu1 %vm500_vm0, %v4615_v45 }
0x269d   : > { %v5537_v61 = vpop.f32.mrb[46].mxu1 }
0x269e   : > { %v4700_v19 = vadd.f32 %v5537_v61, %v5092_v60  ;;  %v4694_v20 = vpop.f32.mrb[47].mxu1 }
0x269f   : > { %v4695_v63 = vadd.f32 %v5092_v60, %v4694_v20 }
0x26a0   : > { %v4706_v28 = vmul.f32 0.044715, %v4700_v19  ;;  %v4704_v10 = vmul.f32 0.5, %v4700_v19 }
0x26a1   : > { %v4705_v30 = vmul.f32 0.044715, %v4695_v63  ;;  %v4703_v48 = vmul.f32 0.5, %v4695_v63 }
0x26a2   : > { %v4708_v62 = vmul.f32 %v4706_v28, %v4700_v19 }
0x26a3   : > { %v4707_v1 = vmul.f32 %v4705_v30, %v4695_v63 }
0x26a4   : > { %v4710_v58 = vmul.f32 %v4708_v62, %v4700_v19 }
0x26a5   : > { %v4709_v2 = vmul.f32 %v4707_v1, %v4695_v63 }
0x26a6   : > { %v4712_v0 = vadd.f32 %v4710_v58, %v4700_v19 }
0x26a7   : > { %v4711_v3 = vadd.f32 %v4709_v2, %v4695_v63 }
0x26a8   : > { %v4714_v4 = vmul.f32 0.7978846, %v4712_v0 }
0x26a9   : > { %v4713_v5 = vmul.f32 0.7978846, %v4711_v3 }
0x26aa   : > { %5752 = vtanh.f32 %v4714_v4 }
0x26ab   : > { %5754 = vtanh.f32 %v4713_v5 }
0x26b4   : > { %v5753_v57 = vpop.eup %5752 }
0x26b5   : > { %v5755_v8 = vpop.eup %5754  ;;  %v4718_v9 = vadd.f32 1.0, %v5753_v57 }
0x26b6   : > { %v4717_v14 = vadd.f32 1.0, %v5755_v8 }
0x26b7   : > { %v4720_v11 = vmul.f32 %v4718_v9, %v4704_v10 }
0x26b8   : > { %v4719_v21 = vmul.f32 %v4717_v14, %v4703_v48 }
0x26ba   : > { %5554 = vmatprep.mubr.msk.f32.mxu0 %vm2559_vm3, %v4719_v21 }
0x26bb   : > { %5555 = vmatmul.mubr.msk.f32.vlgmr.msra.gmra.mrb[38].mxu0 %vm2559_vm3, %v4720_v11 }
0x278e   : > { %v5556_v13 = vpop.f32.mrb[38].mxu0 }
0x278f   : > { %v4803_v22 = vadd.f32 %v5556_v13, %v6365_v6  ;;  %v4793_v23 = vpop.f32.mrb[39].mxu0 }
0x2790   : > { %v4802_v51 = vadd.f32 %v4793_v23, %v6367_v7 }
0x2791   : > { %v4809_v15 = vadd.f32 %v5097_v12, %v4803_v22 }
0x2792   : > { %v4808_v55 = vadd.f32 %v5097_v12, %v4802_v51 }
0x2793   : > { %4811 = vst.msk [vmem:[%s489_s24 + $0x8] sm:$0xff] %vm500_vm0, %v4809_v15 }
0x2794   : > { %4810 = vst.msk [vmem:[%s489_s24] sm:$0xff] %vm500_vm0, %v4808_v55 }
0x2795 PF: > { %s19_s30 = sadd.s32 1, %s5762_s30  }
0x2796   : > { %p16_p4 = scmp.ge.s32.totalorder %s19_s30, 4  }
0x2798   :  { %18 = sbr.rel (!%p16_p4) target bundleno = 1 (0x1), region = 118 }

</bundles_post_ra>
